<compile_context>
chip_gen: v7x
topology: tpu7x:2x2x1
jax: 0.10.0
libtpu: 0.0.40
codegen_flags: <defaults>
</compile_context>

<pallas_src>
import jax
import jax.numpy as jnp
from jax.experimental import pallas as pl
from jax.experimental.pallas import tpu as pltpu  # noqa: F401  (kept for TPU-specific tuning hooks)

# ----------------- configuration (small shapes consistent with the module) -----------------
BS = 2            # batch
N_PAPERS = 4      # CroNDBase `in_channels` arg = papers per author
MAT = 16          # matrix_size
K1 = 4            # kernel_size1
HID = 32          # hidden_size
CH1 = 21          # channel1 is hard-coded to 21 inside CroNDBase.__init__
SIGMA = 0.1       # KernelConv2d sigmas (all 0.1)
H_OUT = (MAT - K1) // K1 + 1      # mat_size_after_kc == left_size == 4
P = K1 * K1                       # patch length == 16
F_IN = H_OUT * N_PAPERS * CH1     # linear_flatten in-features == 336 (order: c, paper, w)
F_ADD = 17
NJ = N_PAPERS * H_OUT             # 16 lane groups, one per (paper, w)
RB = BS * H_OUT                   # 8 rows (b, h) inside each lane group
R = NJ * RB                       # 128 patch rows total

# packed-parameter layout
MATS_ROWS = 96
W1_ROW, WD1_ROW, WD2_ROW = 0, 24, 64
VEC_BF, VEC_WA, VEC_B1, VEC_BD1, VEC_BD2, VEC_SCAL = 0, 1, 2, 3, 4, 5


# ----------------- the single fused Pallas kernel -----------------
def crond_kernel(x_ref, mus_ref, wflat_ref, vecs_ref, mats_ref, fadd_ref,
                 logp_ref, oc_ref):
    # ---- Gaussian "kernel conv" (KernelConv2d + GaussianKernel), rows on lanes ----
    x = x_ref[...]                                   # (P, R) = (16, 128)
    mu = mus_ref[...]                                # (CH1, 1)
    d = x[:, None, :] - mu[None, :, :]               # (16, 21, 128)
    e = jnp.exp(d * d * (-1.0 / (2.0 * SIGMA * SIGMA)))
    s = jnp.sum(e, axis=0)                           # (21, 128)
    # clamp -> log -> *0.01, plus the module-level Tanh, all fused in VMEM
    g = jnp.tanh(jnp.log(jnp.maximum(s, 1e-10)) * 0.01)   # (21, 128)

    # ---- linear_flatten: z2 = tanh(feat @ Wf + bf) without materializing feat ----
    # lanes of g factor into 16 groups of 8: group j = (paper, w), in-group = (b, h).
    gT = g.T                                         # (128, 21); rows = (paper, w, b, h)
    z2_pre = jnp.zeros((RB, HID), jnp.float32)       # (8, 32)
    for j in range(NJ):                              # static, unrolled: 16 tiny MXU dots
        z2_pre = z2_pre + jnp.dot(gT[j * RB:(j + 1) * RB, :], wflat_ref[j],
                                  preferred_element_type=jnp.float32)
    bf = vecs_ref[VEC_BF:VEC_BF + 1, 0:HID]          # (1, 32)
    z2 = jnp.tanh(z2_pre + bf)                       # (8, 32), rows = (b, h)

    # ---- attn_layer_coarse as VPU multiply + lane reduce (avoid 1-lane MXU result) ----
    wa = vecs_ref[VEC_WA:VEC_WA + 1, 0:HID]          # (1, 32)
    ba = vecs_ref[VEC_SCAL:VEC_SCAL + 1, 0:1]        # (1, 1)
    att = jnp.sum(z2 * wa, axis=1, keepdims=True) + ba     # (8, 1)
    z3 = z2.reshape(BS, H_OUT, HID)                  # leading-dim reshapes: layout no-ops
    a3 = att.reshape(BS, H_OUT, 1)
    a3 = a3 - jnp.max(a3, axis=1, keepdims=True)     # softmax over the left_size axis
    ea = jnp.exp(a3)
    attn = ea * pl.reciprocal(jnp.sum(ea, axis=1, keepdims=True), approx=True)
    pooled = jnp.tanh(jnp.sum(attn * z3, axis=1))    # (BS, HID)

    # ---- fc_add_1 + tanh ----
    w1 = mats_ref[W1_ROW:W1_ROW + F_ADD, :]          # (17, 32)
    b1 = vecs_ref[VEC_B1:VEC_B1 + 1, 0:HID]
    fproj = jnp.tanh(jnp.dot(fadd_ref[...], w1,
                             preferred_element_type=jnp.float32) + b1)   # (BS, HID)

    # ---- esb mixing ----
    # TODO(synk): original code reads the external global `settings.data_source`;
    # the 'aminer' branch (0.5/0.5-style mixing) is not implemented here.
    wfeat = vecs_ref[VEC_SCAL:VEC_SCAL + 1, 1:2]     # (1, 1)
    gate = pl.reciprocal(1.0 + jnp.exp(-wfeat), approx=True)   # sigmoid via EUP recip
    mix = (gate / 5.0) * fproj + (1.0 - gate / 5.0) * pooled   # (BS, HID)

    # ---- dense_coarse_1 + tanh, dense_coarse_2, log_softmax ----
    wd1 = mats_ref[WD1_ROW:WD1_ROW + HID, :]         # (32, 32)
    bd1 = vecs_ref[VEC_BD1:VEC_BD1 + 1, 0:HID]
    sc = jnp.tanh(jnp.dot(mix, wd1, preferred_element_type=jnp.float32) + bd1)
    wd2 = mats_ref[WD2_ROW:WD2_ROW + HID, 0:2]       # (32, 2)
    bd2 = vecs_ref[VEC_BD2:VEC_BD2 + 1, 0:2]
    oc = jnp.dot(sc, wd2, preferred_element_type=jnp.float32) + bd2      # (BS, 2)
    oc_ref[...] = oc
    m = jnp.max(oc, axis=1, keepdims=True)
    lse = jnp.log(jnp.sum(jnp.exp(oc - m), axis=1, keepdims=True)) + m
    logp_ref[...] = oc - lse
    # NOTE: fc_add_2 / fc_add_3 in the PyTorch forward are dead code (results unused), skipped.


# ----------------- wrapper: full CroNDBase forward in one pallas_call -----------------
@jax.jit
def crond_forward(sim_mat, f_add, packed):
    bs = sim_mat.shape[0]
    # F.unfold with stride == kernel_size and no padding == crop + block reshape.
    # Patch elements (ky,kx) go on sublanes; patch rows, ordered (paper, w, b, h),
    # go on lanes so the Gaussian math inside the kernel is lane-dense.
    x = sim_mat[:, :, :H_OUT * K1, :H_OUT * K1].astype(jnp.float32)
    x = x.reshape(bs, N_PAPERS, H_OUT, K1, H_OUT, K1)
    x_t = x.transpose(3, 5, 1, 4, 0, 2).reshape(P, NJ * bs * H_OUT)     # (16, 128)
    logp, oc = pl.pallas_call(
        crond_kernel,
        out_shape=(jax.ShapeDtypeStruct((bs, 2), jnp.float32),
                   jax.ShapeDtypeStruct((bs, 2), jnp.float32)),
    )(x_t, packed["mus"], packed["wflat"], packed["vecs"], packed["mats"],
      f_add.astype(jnp.float32))
    return logp, oc


# ----------------- one-time parameter re-layout for the fused kernel -----------------
def pack_params(params):
    # linear_flatten weight: rows ordered (c, paper, w) -> (NJ, CH1, HID) with j=(paper,w)
    wflat = params["wf"].reshape(CH1, NJ, HID).transpose(1, 0, 2)        # (16, 21, 32)
    vecs = jnp.zeros((8, 128), jnp.float32)
    vecs = vecs.at[VEC_BF, :HID].set(params["bf"].reshape(-1))
    vecs = vecs.at[VEC_WA, :HID].set(params["wa"].reshape(-1))
    vecs = vecs.at[VEC_B1, :HID].set(params["b1"].reshape(-1))
    vecs = vecs.at[VEC_BD1, :HID].set(params["bd1"].reshape(-1))
    vecs = vecs.at[VEC_BD2, :2].set(params["bd2"].reshape(-1))
    vecs = vecs.at[VEC_SCAL, 0].set(params["ba"].reshape(()))
    vecs = vecs.at[VEC_SCAL, 1].set(params["wfeat"].reshape(()))
    mats = jnp.zeros((MATS_ROWS, HID), jnp.float32)
    mats = mats.at[W1_ROW:W1_ROW + F_ADD, :].set(params["w1"])
    mats = mats.at[WD1_ROW:WD1_ROW + HID, :].set(params["wd1"])
    mats = mats.at[WD2_ROW:WD2_ROW + HID, 0:2].set(params["wd2"])
    mus_col = params["mus"].reshape(CH1, 1)
    return dict(mus=mus_col, wflat=wflat, vecs=vecs, mats=mats)


# ----------------- pure-JAX reference (torch-ordered math, for sanity check) -----------------
def crond_reference(sim_mat, f_add, params):
    bs = sim_mat.shape[0]
    x = sim_mat[:, :, :H_OUT * K1, :H_OUT * K1].astype(jnp.float32)
    x = x.reshape(bs, N_PAPERS, H_OUT, K1, H_OUT, K1)
    x = x.transpose(0, 1, 2, 4, 3, 5).reshape(bs, N_PAPERS, H_OUT * H_OUT, P)
    d = x[..., None] - params["mus"].reshape(1, 1, 1, 1, CH1)
    g = jnp.exp(-(d * d) / (2.0 * SIGMA * SIGMA)).sum(axis=3)
    g = jnp.tanh(jnp.log(jnp.maximum(g, 1e-10)) * 0.01)                  # (bs, np, L, 21)
    g = g.reshape(bs, N_PAPERS, H_OUT, H_OUT, CH1)
    feat = g.transpose(0, 2, 4, 1, 3).reshape(bs, H_OUT, F_IN)           # (bs, h, (c,np,w))
    z = jnp.tanh(feat @ params["wf"] + params["bf"])
    a = z @ params["wa"] + params["ba"]
    a = jax.nn.softmax(a, axis=1)
    pooled = jnp.tanh(jnp.sum(a * z, axis=1))
    fproj = jnp.tanh(f_add.astype(jnp.float32) @ params["w1"] + params["b1"])
    s = jax.nn.sigmoid(params["wfeat"])
    mix = (s / 5.0) * fproj + (1.0 - s / 5.0) * pooled
    sc = jnp.tanh(mix @ params["wd1"] + params["bd1"])
    oc = sc @ params["wd2"] + params["bd2"]
    return jax.nn.log_softmax(oc, axis=1), oc


# ----------------- deterministic parameter init (torch-ordered) -----------------
def make_params():
    # mus exactly as KernelConv2d.__init__
    mus = [1.0]
    bin_size = 2.0 / (CH1 - 1)
    mus.append(1.0 - bin_size / 2)
    for i in range(1, CH1 - 1):
        mus.append(mus[i] - bin_size)
    mus = jnp.asarray(mus, jnp.float32).reshape(1, CH1)

    def lin(key, fin, fout):
        k1, k2 = jax.random.split(key)
        bound = 1.0 / (fin ** 0.5)
        w = jax.random.uniform(k1, (fin, fout), jnp.float32, -bound, bound)
        b = jax.random.uniform(k2, (1, fout), jnp.float32, -bound, bound)
        return w, b

    keys = jax.random.split(jax.random.PRNGKey(42), 5)
    wf, bf = lin(keys[0], F_IN, HID)       # linear_flatten
    wa, ba = lin(keys[1], HID, 1)          # attn_layer_coarse
    w1, b1 = lin(keys[2], F_ADD, HID)      # fc_add_1
    wd1, bd1 = lin(keys[3], HID, HID)      # dense_coarse_1
    wd2, bd2 = lin(keys[4], HID, 2)        # dense_coarse_2
    wfeat = jnp.zeros((1, 1), jnp.float32)  # weight_feature (init zeros)
    return dict(mus=mus, wf=wf, bf=bf, wa=wa, ba=ba, w1=w1, b1=b1,
                wd1=wd1, bd1=bd1, wd2=wd2, bd2=bd2, wfeat=wfeat)


if __name__ == "__main__":
    params = make_params()
    packed = pack_params(params)
    key = jax.random.PRNGKey(0)
    k_sim, k_add = jax.random.split(key)
    sim_mat = jax.random.uniform(k_sim, (BS, N_PAPERS, MAT, MAT), jnp.float32)  # similarity matrices
    f_add = jax.random.normal(k_add, (BS, F_ADD), jnp.float32)

    logp, out_coarse = crond_forward(sim_mat, f_add, packed)
    logp = jax.block_until_ready(logp)
    out_coarse = jax.block_until_ready(out_coarse)

    assert logp.shape == (BS, 2) and out_coarse.shape == (BS, 2)
    assert bool(jnp.all(jnp.isfinite(logp))) and bool(jnp.all(jnp.isfinite(out_coarse)))
    # probabilities from log_softmax must sum to 1
    assert bool(jnp.allclose(jnp.exp(logp).sum(axis=1), 1.0, atol=1e-4))

    ref_logp, ref_oc = crond_reference(sim_mat, f_add, params)
    assert bool(jnp.allclose(logp, ref_logp, atol=1e-2, rtol=1e-2))
    assert bool(jnp.allclose(out_coarse, ref_oc, atol=1e-2, rtol=1e-2))

    print("KERNEL_OK")
</pallas_src>

<mosaic_0001>
module attributes {stable_mosaic.version = 11 : i64} {
  func.func @crond_kernel(%arg0: memref<16x128xf32, #tpu.memory_space<vmem>>, %arg1: memref<21x1xf32, #tpu.memory_space<vmem>>, %arg2: memref<16x21x32xf32, #tpu.memory_space<vmem>>, %arg3: memref<8x128xf32, #tpu.memory_space<vmem>>, %arg4: memref<96x32xf32, #tpu.memory_space<vmem>>, %arg5: memref<2x17xf32, #tpu.memory_space<vmem>>, %arg6: memref<2x2xf32, #tpu.memory_space<vmem>>, %arg7: memref<2x2xf32, #tpu.memory_space<vmem>>) attributes {dimension_semantics = [], scalar_prefetch = 0 : i64, scratch_operands = 0 : i64, tpu.core_type = #tpu.core_type<tc>} {
    %c0 = arith.constant 0 : index
    %c0_0 = arith.constant 0 : index
    %0 = vector.load %arg0[%c0, %c0_0] : memref<16x128xf32, #tpu.memory_space<vmem>>, vector<16x128xf32>
    %c0_1 = arith.constant 0 : index
    %c0_2 = arith.constant 0 : index
    %1 = vector.load %arg1[%c0_1, %c0_2] : memref<21x1xf32, #tpu.memory_space<vmem>>, vector<21x1xf32>
    %2 = vector.shape_cast %0 : vector<16x128xf32> to vector<16x1x128xf32>
    %3 = vector.shape_cast %1 : vector<21x1xf32> to vector<1x21x1xf32>
    %4 = vector.broadcast %2 : vector<16x1x128xf32> to vector<16x21x128xf32>
    %5 = vector.broadcast %3 : vector<1x21x1xf32> to vector<16x21x128xf32>
    %6 = arith.subf %4, %5 : vector<16x21x128xf32>
    %7 = arith.mulf %6, %6 : vector<16x21x128xf32>
    %cst = arith.constant -5.000000e+01 : f32
    %8 = vector.broadcast %cst : f32 to vector<16x21x128xf32>
    %9 = arith.mulf %7, %8 : vector<16x21x128xf32>
    %10 = math.exp %9 : vector<16x21x128xf32>
    %cst_3 = arith.constant dense<0.000000e+00> : vector<21x128xf32>
    %11 = vector.multi_reduction <add>, %10, %cst_3 [0] : vector<16x21x128xf32> to vector<21x128xf32>
    %cst_4 = arith.constant 1.000000e-10 : f32
    %12 = vector.broadcast %cst_4 : f32 to vector<21x128xf32>
    %13 = arith.maximumf %11, %12 : vector<21x128xf32>
    %14 = math.log %13 : vector<21x128xf32>
    %cst_5 = arith.constant 0.00999999977 : f32
    %15 = vector.broadcast %cst_5 : f32 to vector<21x128xf32>
    %16 = arith.mulf %14, %15 : vector<21x128xf32>
    %17 = math.tanh %16 : vector<21x128xf32>
    %18 = tpu.transpose %17, [1, 0] : vector<21x128xf32> -> vector<128x21xf32>
    %cst_6 = arith.constant 0.000000e+00 : f32
    %19 = vector.broadcast %cst_6 : f32 to vector<8x32xf32>
    %20 = vector.extract_strided_slice %18 {offsets = [0, 0], sizes = [8, 21], strides = [1, 1]} : vector<128x21xf32> to vector<8x21xf32>
    %c0_7 = arith.constant 0 : index
    %c0_8 = arith.constant 0 : index
    %c0_9 = arith.constant 0 : index
    %21 = vector.load %arg2[%c0_7, %c0_8, %c0_9] : memref<16x21x32xf32, #tpu.memory_space<vmem>>, vector<1x21x32xf32>
    %22 = vector.shape_cast %21 : vector<1x21x32xf32> to vector<21x32xf32>
    %cst_10 = arith.constant dense<0.000000e+00> : vector<8x32xf32>
    %23 = tpu.matmul %20, %22, %cst_10 {dimension_numbers = #tpu.dot_dimension_numbers<[1], [0], [0], [1], [0, 0, 1, 1], [], []>} : vector<8x21xf32>, vector<21x32xf32>, vector<8x32xf32> -> vector<8x32xf32>
    %24 = arith.addf %19, %23 : vector<8x32xf32>
    %25 = vector.extract_strided_slice %18 {offsets = [8, 0], sizes = [8, 21], strides = [1, 1]} : vector<128x21xf32> to vector<8x21xf32>
    %c1 = arith.constant 1 : index
    %c0_11 = arith.constant 0 : index
    %c0_12 = arith.constant 0 : index
    %26 = vector.load %arg2[%c1, %c0_11, %c0_12] : memref<16x21x32xf32, #tpu.memory_space<vmem>>, vector<1x21x32xf32>
    %27 = vector.shape_cast %26 : vector<1x21x32xf32> to vector<21x32xf32>
    %cst_13 = arith.constant dense<0.000000e+00> : vector<8x32xf32>
    %28 = tpu.matmul %25, %27, %cst_13 {dimension_numbers = #tpu.dot_dimension_numbers<[1], [0], [0], [1], [0, 0, 1, 1], [], []>} : vector<8x21xf32>, vector<21x32xf32>, vector<8x32xf32> -> vector<8x32xf32>
    %29 = arith.addf %24, %28 : vector<8x32xf32>
    %30 = vector.extract_strided_slice %18 {offsets = [16, 0], sizes = [8, 21], strides = [1, 1]} : vector<128x21xf32> to vector<8x21xf32>
    %c2 = arith.constant 2 : index
    %c0_14 = arith.constant 0 : index
    %c0_15 = arith.constant 0 : index
    %31 = vector.load %arg2[%c2, %c0_14, %c0_15] : memref<16x21x32xf32, #tpu.memory_space<vmem>>, vector<1x21x32xf32>
    %32 = vector.shape_cast %31 : vector<1x21x32xf32> to vector<21x32xf32>
    %cst_16 = arith.constant dense<0.000000e+00> : vector<8x32xf32>
    %33 = tpu.matmul %30, %32, %cst_16 {dimension_numbers = #tpu.dot_dimension_numbers<[1], [0], [0], [1], [0, 0, 1, 1], [], []>} : vector<8x21xf32>, vector<21x32xf32>, vector<8x32xf32> -> vector<8x32xf32>
    %34 = arith.addf %29, %33 : vector<8x32xf32>
    %35 = vector.extract_strided_slice %18 {offsets = [24, 0], sizes = [8, 21], strides = [1, 1]} : vector<128x21xf32> to vector<8x21xf32>
    %c3 = arith.constant 3 : index
    %c0_17 = arith.constant 0 : index
    %c0_18 = arith.constant 0 : index
    %36 = vector.load %arg2[%c3, %c0_17, %c0_18] : memref<16x21x32xf32, #tpu.memory_space<vmem>>, vector<1x21x32xf32>
    %37 = vector.shape_cast %36 : vector<1x21x32xf32> to vector<21x32xf32>
    %cst_19 = arith.constant dense<0.000000e+00> : vector<8x32xf32>
    %38 = tpu.matmul %35, %37, %cst_19 {dimension_numbers = #tpu.dot_dimension_numbers<[1], [0], [0], [1], [0, 0, 1, 1], [], []>} : vector<8x21xf32>, vector<21x32xf32>, vector<8x32xf32> -> vector<8x32xf32>
    %39 = arith.addf %34, %38 : vector<8x32xf32>
    %40 = vector.extract_strided_slice %18 {offsets = [32, 0], sizes = [8, 21], strides = [1, 1]} : vector<128x21xf32> to vector<8x21xf32>
    %c4 = arith.constant 4 : index
    %c0_20 = arith.constant 0 : index
    %c0_21 = arith.constant 0 : index
    %41 = vector.load %arg2[%c4, %c0_20, %c0_21] : memref<16x21x32xf32, #tpu.memory_space<vmem>>, vector<1x21x32xf32>
    %42 = vector.shape_cast %41 : vector<1x21x32xf32> to vector<21x32xf32>
    %cst_22 = arith.constant dense<0.000000e+00> : vector<8x32xf32>
    %43 = tpu.matmul %40, %42, %cst_22 {dimension_numbers = #tpu.dot_dimension_numbers<[1], [0], [0], [1], [0, 0, 1, 1], [], []>} : vector<8x21xf32>, vector<21x32xf32>, vector<8x32xf32> -> vector<8x32xf32>
    %44 = arith.addf %39, %43 : vector<8x32xf32>
    %45 = vector.extract_strided_slice %18 {offsets = [40, 0], sizes = [8, 21], strides = [1, 1]} : vector<128x21xf32> to vector<8x21xf32>
    %c5 = arith.constant 5 : index
    %c0_23 = arith.constant 0 : index
    %c0_24 = arith.constant 0 : index
    %46 = vector.load %arg2[%c5, %c0_23, %c0_24] : memref<16x21x32xf32, #tpu.memory_space<vmem>>, vector<1x21x32xf32>
    %47 = vector.shape_cast %46 : vector<1x21x32xf32> to vector<21x32xf32>
    %cst_25 = arith.constant dense<0.000000e+00> : vector<8x32xf32>
    %48 = tpu.matmul %45, %47, %cst_25 {dimension_numbers = #tpu.dot_dimension_numbers<[1], [0], [0], [1], [0, 0, 1, 1], [], []>} : vector<8x21xf32>, vector<21x32xf32>, vector<8x32xf32> -> vector<8x32xf32>
    %49 = arith.addf %44, %48 : vector<8x32xf32>
    %50 = vector.extract_strided_slice %18 {offsets = [48, 0], sizes = [8, 21], strides = [1, 1]} : vector<128x21xf32> to vector<8x21xf32>
    %c6 = arith.constant 6 : index
    %c0_26 = arith.constant 0 : index
    %c0_27 = arith.constant 0 : index
    %51 = vector.load %arg2[%c6, %c0_26, %c0_27] : memref<16x21x32xf32, #tpu.memory_space<vmem>>, vector<1x21x32xf32>
    %52 = vector.shape_cast %51 : vector<1x21x32xf32> to vector<21x32xf32>
    %cst_28 = arith.constant dense<0.000000e+00> : vector<8x32xf32>
    %53 = tpu.matmul %50, %52, %cst_28 {dimension_numbers = #tpu.dot_dimension_numbers<[1], [0], [0], [1], [0, 0, 1, 1], [], []>} : vector<8x21xf32>, vector<21x32xf32>, vector<8x32xf32> -> vector<8x32xf32>
    %54 = arith.addf %49, %53 : vector<8x32xf32>
    %55 = vector.extract_strided_slice %18 {offsets = [56, 0], sizes = [8, 21], strides = [1, 1]} : vector<128x21xf32> to vector<8x21xf32>
    %c7 = arith.constant 7 : index
    %c0_29 = arith.constant 0 : index
    %c0_30 = arith.constant 0 : index
    %56 = vector.load %arg2[%c7, %c0_29, %c0_30] : memref<16x21x32xf32, #tpu.memory_space<vmem>>, vector<1x21x32xf32>
    %57 = vector.shape_cast %56 : vector<1x21x32xf32> to vector<21x32xf32>
    %cst_31 = arith.constant dense<0.000000e+00> : vector<8x32xf32>
    %58 = tpu.matmul %55, %57, %cst_31 {dimension_numbers = #tpu.dot_dimension_numbers<[1], [0], [0], [1], [0, 0, 1, 1], [], []>} : vector<8x21xf32>, vector<21x32xf32>, vector<8x32xf32> -> vector<8x32xf32>
    %59 = arith.addf %54, %58 : vector<8x32xf32>
    %60 = vector.extract_strided_slice %18 {offsets = [64, 0], sizes = [8, 21], strides = [1, 1]} : vector<128x21xf32> to vector<8x21xf32>
    %c8 = arith.constant 8 : index
    %c0_32 = arith.constant 0 : index
    %c0_33 = arith.constant 0 : index
    %61 = vector.load %arg2[%c8, %c0_32, %c0_33] : memref<16x21x32xf32, #tpu.memory_space<vmem>>, vector<1x21x32xf32>
    %62 = vector.shape_cast %61 : vector<1x21x32xf32> to vector<21x32xf32>
    %cst_34 = arith.constant dense<0.000000e+00> : vector<8x32xf32>
    %63 = tpu.matmul %60, %62, %cst_34 {dimension_numbers = #tpu.dot_dimension_numbers<[1], [0], [0], [1], [0, 0, 1, 1], [], []>} : vector<8x21xf32>, vector<21x32xf32>, vector<8x32xf32> -> vector<8x32xf32>
    %64 = arith.addf %59, %63 : vector<8x32xf32>
    %65 = vector.extract_strided_slice %18 {offsets = [72, 0], sizes = [8, 21], strides = [1, 1]} : vector<128x21xf32> to vector<8x21xf32>
    %c9 = arith.constant 9 : index
    %c0_35 = arith.constant 0 : index
    %c0_36 = arith.constant 0 : index
    %66 = vector.load %arg2[%c9, %c0_35, %c0_36] : memref<16x21x32xf32, #tpu.memory_space<vmem>>, vector<1x21x32xf32>
    %67 = vector.shape_cast %66 : vector<1x21x32xf32> to vector<21x32xf32>
    %cst_37 = arith.constant dense<0.000000e+00> : vector<8x32xf32>
    %68 = tpu.matmul %65, %67, %cst_37 {dimension_numbers = #tpu.dot_dimension_numbers<[1], [0], [0], [1], [0, 0, 1, 1], [], []>} : vector<8x21xf32>, vector<21x32xf32>, vector<8x32xf32> -> vector<8x32xf32>
    %69 = arith.addf %64, %68 : vector<8x32xf32>
    %70 = vector.extract_strided_slice %18 {offsets = [80, 0], sizes = [8, 21], strides = [1, 1]} : vector<128x21xf32> to vector<8x21xf32>
    %c10 = arith.constant 10 : index
    %c0_38 = arith.constant 0 : index
    %c0_39 = arith.constant 0 : index
    %71 = vector.load %arg2[%c10, %c0_38, %c0_39] : memref<16x21x32xf32, #tpu.memory_space<vmem>>, vector<1x21x32xf32>
    %72 = vector.shape_cast %71 : vector<1x21x32xf32> to vector<21x32xf32>
    %cst_40 = arith.constant dense<0.000000e+00> : vector<8x32xf32>
    %73 = tpu.matmul %70, %72, %cst_40 {dimension_numbers = #tpu.dot_dimension_numbers<[1], [0], [0], [1], [0, 0, 1, 1], [], []>} : vector<8x21xf32>, vector<21x32xf32>, vector<8x32xf32> -> vector<8x32xf32>
    %74 = arith.addf %69, %73 : vector<8x32xf32>
    %75 = vector.extract_strided_slice %18 {offsets = [88, 0], sizes = [8, 21], strides = [1, 1]} : vector<128x21xf32> to vector<8x21xf32>
    %c11 = arith.constant 11 : index
    %c0_41 = arith.constant 0 : index
    %c0_42 = arith.constant 0 : index
    %76 = vector.load %arg2[%c11, %c0_41, %c0_42] : memref<16x21x32xf32, #tpu.memory_space<vmem>>, vector<1x21x32xf32>
    %77 = vector.shape_cast %76 : vector<1x21x32xf32> to vector<21x32xf32>
    %cst_43 = arith.constant dense<0.000000e+00> : vector<8x32xf32>
    %78 = tpu.matmul %75, %77, %cst_43 {dimension_numbers = #tpu.dot_dimension_numbers<[1], [0], [0], [1], [0, 0, 1, 1], [], []>} : vector<8x21xf32>, vector<21x32xf32>, vector<8x32xf32> -> vector<8x32xf32>
    %79 = arith.addf %74, %78 : vector<8x32xf32>
    %80 = vector.extract_strided_slice %18 {offsets = [96, 0], sizes = [8, 21], strides = [1, 1]} : vector<128x21xf32> to vector<8x21xf32>
    %c12 = arith.constant 12 : index
    %c0_44 = arith.constant 0 : index
    %c0_45 = arith.constant 0 : index
    %81 = vector.load %arg2[%c12, %c0_44, %c0_45] : memref<16x21x32xf32, #tpu.memory_space<vmem>>, vector<1x21x32xf32>
    %82 = vector.shape_cast %81 : vector<1x21x32xf32> to vector<21x32xf32>
    %cst_46 = arith.constant dense<0.000000e+00> : vector<8x32xf32>
    %83 = tpu.matmul %80, %82, %cst_46 {dimension_numbers = #tpu.dot_dimension_numbers<[1], [0], [0], [1], [0, 0, 1, 1], [], []>} : vector<8x21xf32>, vector<21x32xf32>, vector<8x32xf32> -> vector<8x32xf32>
    %84 = arith.addf %79, %83 : vector<8x32xf32>
    %85 = vector.extract_strided_slice %18 {offsets = [104, 0], sizes = [8, 21], strides = [1, 1]} : vector<128x21xf32> to vector<8x21xf32>
    %c13 = arith.constant 13 : index
    %c0_47 = arith.constant 0 : index
    %c0_48 = arith.constant 0 : index
    %86 = vector.load %arg2[%c13, %c0_47, %c0_48] : memref<16x21x32xf32, #tpu.memory_space<vmem>>, vector<1x21x32xf32>
    %87 = vector.shape_cast %86 : vector<1x21x32xf32> to vector<21x32xf32>
    %cst_49 = arith.constant dense<0.000000e+00> : vector<8x32xf32>
    %88 = tpu.matmul %85, %87, %cst_49 {dimension_numbers = #tpu.dot_dimension_numbers<[1], [0], [0], [1], [0, 0, 1, 1], [], []>} : vector<8x21xf32>, vector<21x32xf32>, vector<8x32xf32> -> vector<8x32xf32>
    %89 = arith.addf %84, %88 : vector<8x32xf32>
    %90 = vector.extract_strided_slice %18 {offsets = [112, 0], sizes = [8, 21], strides = [1, 1]} : vector<128x21xf32> to vector<8x21xf32>
    %c14 = arith.constant 14 : index
    %c0_50 = arith.constant 0 : index
    %c0_51 = arith.constant 0 : index
    %91 = vector.load %arg2[%c14, %c0_50, %c0_51] : memref<16x21x32xf32, #tpu.memory_space<vmem>>, vector<1x21x32xf32>
    %92 = vector.shape_cast %91 : vector<1x21x32xf32> to vector<21x32xf32>
    %cst_52 = arith.constant dense<0.000000e+00> : vector<8x32xf32>
    %93 = tpu.matmul %90, %92, %cst_52 {dimension_numbers = #tpu.dot_dimension_numbers<[1], [0], [0], [1], [0, 0, 1, 1], [], []>} : vector<8x21xf32>, vector<21x32xf32>, vector<8x32xf32> -> vector<8x32xf32>
    %94 = arith.addf %89, %93 : vector<8x32xf32>
    %95 = vector.extract_strided_slice %18 {offsets = [120, 0], sizes = [8, 21], strides = [1, 1]} : vector<128x21xf32> to vector<8x21xf32>
    %c15 = arith.constant 15 : index
    %c0_53 = arith.constant 0 : index
    %c0_54 = arith.constant 0 : index
    %96 = vector.load %arg2[%c15, %c0_53, %c0_54] : memref<16x21x32xf32, #tpu.memory_space<vmem>>, vector<1x21x32xf32>
    %97 = vector.shape_cast %96 : vector<1x21x32xf32> to vector<21x32xf32>
    %cst_55 = arith.constant dense<0.000000e+00> : vector<8x32xf32>
    %98 = tpu.matmul %95, %97, %cst_55 {dimension_numbers = #tpu.dot_dimension_numbers<[1], [0], [0], [1], [0, 0, 1, 1], [], []>} : vector<8x21xf32>, vector<21x32xf32>, vector<8x32xf32> -> vector<8x32xf32>
    %99 = arith.addf %94, %98 : vector<8x32xf32>
    %c0_56 = arith.constant 0 : index
    %c0_57 = arith.constant 0 : index
    %100 = vector.load %arg3[%c0_56, %c0_57] : memref<8x128xf32, #tpu.memory_space<vmem>>, vector<1x32xf32>
    %101 = vector.broadcast %100 : vector<1x32xf32> to vector<8x32xf32>
    %102 = arith.addf %99, %101 : vector<8x32xf32>
    %103 = math.tanh %102 : vector<8x32xf32>
    %c1_58 = arith.constant 1 : index
    %c0_59 = arith.constant 0 : index
    %104 = vector.load %arg3[%c1_58, %c0_59] : memref<8x128xf32, #tpu.memory_space<vmem>>, vector<1x32xf32>
    %c5_60 = arith.constant 5 : index
    %c0_61 = arith.constant 0 : index
    %105 = vector.load %arg3[%c5_60, %c0_61] : memref<8x128xf32, #tpu.memory_space<vmem>>, vector<1x1xf32>
    %106 = vector.broadcast %104 : vector<1x32xf32> to vector<8x32xf32>
    %107 = arith.mulf %103, %106 : vector<8x32xf32>
    %cst_62 = arith.constant dense<0.000000e+00> : vector<8xf32>
    %108 = vector.multi_reduction <add>, %107, %cst_62 [1] : vector<8x32xf32> to vector<8xf32>
    %109 = vector.shape_cast %108 : vector<8xf32> to vector<8x1xf32>
    %110 = vector.broadcast %105 : vector<1x1xf32> to vector<8x1xf32>
    %111 = arith.addf %109, %110 : vector<8x1xf32>
    %112 = vector.shape_cast %103 : vector<8x32xf32> to vector<2x4x32xf32>
    %113 = vector.shape_cast %111 : vector<8x1xf32> to vector<2x4x1xf32>
    %cst_63 = arith.constant dense<0xFF800000> : vector<2x1xf32>
    %114 = vector.multi_reduction <maximumf>, %113, %cst_63 [1] : vector<2x4x1xf32> to vector<2x1xf32>
    %115 = vector.shape_cast %114 : vector<2x1xf32> to vector<2x1x1xf32>
    %116 = vector.broadcast %115 : vector<2x1x1xf32> to vector<2x4x1xf32>
    %117 = arith.subf %113, %116 : vector<2x4x1xf32>
    %118 = math.exp %117 : vector<2x4x1xf32>
    %cst_64 = arith.constant dense<0.000000e+00> : vector<2x1xf32>
    %119 = vector.multi_reduction <add>, %118, %cst_64 [1] : vector<2x4x1xf32> to vector<2x1xf32>
    %120 = vector.shape_cast %119 : vector<2x1xf32> to vector<2x1x1xf32>
    %121 = tpu.reciprocal %120 {approx = true} : vector<2x1x1xf32> -> vector<2x1x1xf32>
    %122 = vector.broadcast %121 : vector<2x1x1xf32> to vector<2x4x1xf32>
    %123 = arith.mulf %118, %122 : vector<2x4x1xf32>
    %124 = vector.broadcast %123 : vector<2x4x1xf32> to vector<2x4x32xf32>
    %125 = arith.mulf %124, %112 : vector<2x4x32xf32>
    %cst_65 = arith.constant dense<0.000000e+00> : vector<2x32xf32>
    %126 = vector.multi_reduction <add>, %125, %cst_65 [1] : vector<2x4x32xf32> to vector<2x32xf32>
    %127 = math.tanh %126 : vector<2x32xf32>
    %c0_66 = arith.constant 0 : index
    %c0_67 = arith.constant 0 : index
    %128 = vector.load %arg4[%c0_66, %c0_67] : memref<96x32xf32, #tpu.memory_space<vmem>>, vector<17x32xf32>
    %c2_68 = arith.constant 2 : index
    %c0_69 = arith.constant 0 : index
    %129 = vector.load %arg3[%c2_68, %c0_69] : memref<8x128xf32, #tpu.memory_space<vmem>>, vector<1x32xf32>
    %c0_70 = arith.constant 0 : index
    %c0_71 = arith.constant 0 : index
    %130 = vector.load %arg5[%c0_70, %c0_71] : memref<2x17xf32, #tpu.memory_space<vmem>>, vector<2x17xf32>
    %cst_72 = arith.constant dense<0.000000e+00> : vector<2x32xf32>
    %131 = tpu.matmul %130, %128, %cst_72 {dimension_numbers = #tpu.dot_dimension_numbers<[1], [0], [0], [1], [0, 0, 1, 1], [], []>} : vector<2x17xf32>, vector<17x32xf32>, vector<2x32xf32> -> vector<2x32xf32>
    %132 = vector.broadcast %129 : vector<1x32xf32> to vector<2x32xf32>
    %133 = arith.addf %131, %132 : vector<2x32xf32>
    %134 = math.tanh %133 : vector<2x32xf32>
    %c5_73 = arith.constant 5 : index
    %c1_74 = arith.constant 1 : index
    %135 = vector.load %arg3[%c5_73, %c1_74] : memref<8x128xf32, #tpu.memory_space<vmem>>, vector<1x1xf32>
    %cst_75 = arith.constant 0.000000e+00 : f32
    %136 = vector.broadcast %cst_75 : f32 to vector<1x1xf32>
    %137 = arith.subf %136, %135 : vector<1x1xf32>
    %138 = math.exp %137 : vector<1x1xf32>
    %cst_76 = arith.constant 1.000000e+00 : f32
    %139 = vector.broadcast %cst_76 : f32 to vector<1x1xf32>
    %140 = arith.addf %139, %138 : vector<1x1xf32>
    %141 = tpu.reciprocal %140 {approx = true} : vector<1x1xf32> -> vector<1x1xf32>
    %cst_77 = arith.constant 5.000000e+00 : f32
    %142 = vector.broadcast %cst_77 : f32 to vector<1x1xf32>
    %143 = arith.divf %141, %142 : vector<1x1xf32>
    %144 = vector.broadcast %143 : vector<1x1xf32> to vector<2x32xf32>
    %145 = arith.mulf %144, %134 : vector<2x32xf32>
    %cst_78 = arith.constant 5.000000e+00 : f32
    %146 = vector.broadcast %cst_78 : f32 to vector<1x1xf32>
    %147 = arith.divf %141, %146 : vector<1x1xf32>
    %cst_79 = arith.constant 1.000000e+00 : f32
    %148 = vector.broadcast %cst_79 : f32 to vector<1x1xf32>
    %149 = arith.subf %148, %147 : vector<1x1xf32>
    %150 = vector.broadcast %149 : vector<1x1xf32> to vector<2x32xf32>
    %151 = arith.mulf %150, %127 : vector<2x32xf32>
    %152 = arith.addf %145, %151 : vector<2x32xf32>
    %c24 = arith.constant 24 : index
    %c0_80 = arith.constant 0 : index
    %153 = vector.load %arg4[%c24, %c0_80] : memref<96x32xf32, #tpu.memory_space<vmem>>, vector<32x32xf32>
    %c3_81 = arith.constant 3 : index
    %c0_82 = arith.constant 0 : index
    %154 = vector.load %arg3[%c3_81, %c0_82] : memref<8x128xf32, #tpu.memory_space<vmem>>, vector<1x32xf32>
    %cst_83 = arith.constant dense<0.000000e+00> : vector<2x32xf32>
    %155 = tpu.matmul %152, %153, %cst_83 {dimension_numbers = #tpu.dot_dimension_numbers<[1], [0], [0], [1], [0, 0, 1, 1], [], []>} : vector<2x32xf32>, vector<32x32xf32>, vector<2x32xf32> -> vector<2x32xf32>
    %156 = vector.broadcast %154 : vector<1x32xf32> to vector<2x32xf32>
    %157 = arith.addf %155, %156 : vector<2x32xf32>
    %158 = math.tanh %157 : vector<2x32xf32>
    %c64 = arith.constant 64 : index
    %c0_84 = arith.constant 0 : index
    %159 = vector.load %arg4[%c64, %c0_84] : memref<96x32xf32, #tpu.memory_space<vmem>>, vector<32x2xf32>
    %c4_85 = arith.constant 4 : index
    %c0_86 = arith.constant 0 : index
    %160 = vector.load %arg3[%c4_85, %c0_86] : memref<8x128xf32, #tpu.memory_space<vmem>>, vector<1x2xf32>
    %cst_87 = arith.constant dense<0.000000e+00> : vector<2x2xf32>
    %161 = tpu.matmul %158, %159, %cst_87 {dimension_numbers = #tpu.dot_dimension_numbers<[1], [0], [0], [1], [0, 0, 1, 1], [], []>} : vector<2x32xf32>, vector<32x2xf32>, vector<2x2xf32> -> vector<2x2xf32>
    %162 = vector.broadcast %160 : vector<1x2xf32> to vector<2x2xf32>
    %163 = arith.addf %161, %162 : vector<2x2xf32>
    %c0_88 = arith.constant 0 : index
    %c0_89 = arith.constant 0 : index
    %164 = vector.load %arg7[%c0_88, %c0_89] : memref<2x2xf32, #tpu.memory_space<vmem>>, vector<2x2xf32>
    tpu.vector_store %arg7[%c0_88, %c0_89], %163 {strides = array<i32>} : memref<2x2xf32, #tpu.memory_space<vmem>>, vector<2x2xf32>,
    %cst_90 = arith.constant dense<0xFF800000> : vector<2xf32>
    %165 = vector.multi_reduction <maximumf>, %163, %cst_90 [1] : vector<2x2xf32> to vector<2xf32>
    %166 = vector.shape_cast %165 : vector<2xf32> to vector<2x1xf32>
    %167 = vector.broadcast %166 : vector<2x1xf32> to vector<2x2xf32>
    %168 = arith.subf %163, %167 : vector<2x2xf32>
    %169 = math.exp %168 : vector<2x2xf32>
    %cst_91 = arith.constant dense<0.000000e+00> : vector<2xf32>
    %170 = vector.multi_reduction <add>, %169, %cst_91 [1] : vector<2x2xf32> to vector<2xf32>
    %171 = vector.shape_cast %170 : vector<2xf32> to vector<2x1xf32>
    %172 = math.log %171 : vector<2x1xf32>
    %173 = arith.addf %172, %166 : vector<2x1xf32>
    %174 = vector.broadcast %173 : vector<2x1xf32> to vector<2x2xf32>
    %175 = arith.subf %163, %174 : vector<2x2xf32>
    %c0_92 = arith.constant 0 : index
    %c0_93 = arith.constant 0 : index
    %176 = vector.load %arg6[%c0_92, %c0_93] : memref<2x2xf32, #tpu.memory_space<vmem>>, vector<2x2xf32>
    tpu.vector_store %arg6[%c0_92, %c0_93], %175 {strides = array<i32>} : memref<2x2xf32, #tpu.memory_space<vmem>>, vector<2x2xf32>,
    return
  }
}

</mosaic_0001>

<bundles_post_ra>
// kernel: crond_forward.1
= control target key start
LH: loop header
LB: loop body
LE: loop exit
PB: predicated region body
PF: predicated region fallthrough
CT: control target
= control target key end

     0   :  { %13 = vsyncpa [#allocation3], 0  ;;  %v2910_v2 = vmov 0   ;;  %s3483_s0 = inlined_call_operand.vmem [shape: f32[16,128], index: 0, kind: input, shape index: {}]   ;;  %s3484_s1 = inlined_call_operand.vmem [shape: f32[21,1], index: 1, kind: input, shape index: {}]   ;;  %s3485_s2 = inlined_call_operand.vmem [shape: f32[16,21,32], index: 2, kind: input, shape index: {}]   ;;  %s3486_s3 = inlined_call_operand.vmem [shape: f32[8,128], index: 3, kind: input, shape index: {}]   ;;  %s3487_s4 = inlined_call_operand.vmem [shape: f32[96,32], index: 4, kind: input, shape index: {}]   ;;  %s3488_s5 = inlined_call_operand.vmem [shape: f32[2,17], index: 5, kind: input, shape index: {}]   ;;  %s3489_s6 = inlined_call_operand.hbm [shape: f32[2,2], index: 6, kind: output, shape index: {0}]   ;;  %s3490_s7 = inlined_call_operand.hbm [shape: f32[2,2], index: 7, kind: output, shape index: {1}]  }
   0x1   :  { %v31_v0 = vld [vmem:[%s3484_s1 + $0x10] sm:$0x1f]  ;;  %v29_v1 = vld [vmem:[%s3484_s1] sm:$0xff]  ;;  %2725 = vset.pattern.permute.xlu1 %v2910_v2  ;;  %2724 = vset.pattern.permute.xlu0 %v2910_v2 }
   0x2   :  { %14 = vsyncpa [#allocation5], 0  ;;  %224 = vperm.xlu1 %2725, %v31_v0   ;;  %214 = vperm.xlu0 %2724, %v29_v1   ;;  %v30_v3 = vld [vmem:[%s3484_s1 + $0x8] sm:$0xff]  ;;  %v2911_v4 = vmov 1966171168   ;;  %v38_v6 = vlaneseq  ;;  %v27_v10 = vld [vmem:[%s3483_s0] sm:$0xff] }
   0x3   :  { %v36_v5 = vunpack.c.l.s4 %v2911_v4  ;;  %v28_v12 = vld [vmem:[%s3483_s0 + $0x8] sm:$0xff]  ;;  %v34_v13 = vcombine.high %v27_v10, %v27_v10  ;;  %vm497_vm0 = vcmask 1044480   ;;  %vm2914_vm1 = vmmov 0   ;;  %s2915_s17 = smov 127  }
   0x4   :  { %v2968_v8 = vshrl.u32 %v38_v6, 7  ;;  %v83_v14 = vcombine.high %v28_v12, %v28_v12  ;;  %vm583_vm2 = vcmask 171008   ;;  %vm1994_vm3 = vcmask 1040384  }
   0x5   :  { %v37_v7 = vunpack.c.0.s8 %v36_v5  ;;  %vm1990_vm4 = vcmask 138240   ;;  %vm1884_vm5 = vcmask 261120   ;;  %vm1899_vm6 = vcmask 3072  }
   0x6   :  { %219 = vperm.xlu0 %2724, %v30_v3   ;;  %3492 = vst [vmem:[#allocation8_spill] sm:$0xff] %v2968_v8  ;;  %v134_v16 = vsub.s32 0, %v2968_v8  ;;  %vm1964_vm7 = vcmask 257024   ;;  %vm2095_vm8 = vcmask 1041409   ;;  %vm2264_vm9 = vcmask 9216  }
   0x7   :  { %v40_v9 = vsub.s32 %v37_v7, %v2968_v8 }
   0x9   :  { %v41_v11 = vrot.slane %v27_v10, %v40_v9  ;;  %v48_v18 = vrot.slane %v34_v13, %v40_v9  ;;  %v90_v19 = vrot.slane %v28_v12, %v40_v9  ;;  %v97_v20 = vrot.slane %v83_v14, %v40_v9 }
   0xb   :  { %v49_v15 = vcombine.high %v41_v11, %v41_v11  ;;  %v57_v17 = vrot.slane %v41_v11, %v40_v9  ;;  %v50_v24 = vcombine.high %v48_v18, %v48_v18  ;;  %v98_v26 = vcombine.high %v90_v19, %v90_v19 }
   0xc   :  { %v99_v27 = vcombine.high %v97_v20, %v97_v20  ;;  %v64_v30 = vrot.slane %v48_v18, %v40_v9  ;;  %v106_v35 = vrot.slane %v90_v19, %v40_v9  ;;  %v113_v36 = vrot.slane %v97_v20, %v40_v9 }
   0xd   :  { %v71_v21 = vrot.slane %v49_v15, %v40_v9  ;;  %v79_v22 = vcombine.high %v57_v17, %v57_v17  ;;  %v135_v23 = vrot.slane %v57_v17, %v134_v16  ;;  %v78_v33 = vrot.slane %v50_v24, %v40_v9 }
   0xe   :  { %v120_v38 = vrot.slane %v98_v26, %v40_v9  ;;  %v127_v39 = vrot.slane %v99_v27, %v40_v9  ;;  %v80_v41 = vcombine.high %v64_v30, %v64_v30  ;;  %v128_v48 = vcombine.high %v106_v35, %v106_v35 }
   0xf   :  { %v139_v25 = vrot.slane %v71_v21, %v134_v16  ;;  %v143_v31 = vrot.slane %v79_v22, %v134_v16  ;;  %v81_v42 = vcombine.high %v71_v21, %v71_v21  ;;  %v82_v45 = vcombine.high %v78_v33, %v78_v33 }
  0x10   :  { %v129_v49 = vcombine.high %v113_v36, %v113_v36  ;;  %v130_v52 = vcombine.high %v120_v38, %v120_v38  ;;  %v131_v53 = vcombine.high %v127_v39, %v127_v39  ;;  %v151_v55 = vrot.slane %v64_v30, %v134_v16 }
  0x11   :  { %v147_v54 = vrot.slane %v81_v42, %v134_v16  ;;  %v155_v56 = vrot.slane %v78_v33, %v134_v16  ;;  %v159_v57 = vrot.slane %v80_v41, %v134_v16  ;;  %v163_v60 = vrot.slane %v82_v45, %v134_v16 }
  0x12   :  { %v167_v61 = vrot.slane %v106_v35, %v134_v16  ;;  %v171_v0 = vrot.slane %v120_v38, %v134_v16  ;;  %v175_v1 = vrot.slane %v128_v48, %v134_v16  ;;  %v179_v4 = vrot.slane %v130_v52, %v134_v16 }
  0x13   :  { %v183_v5 = vrot.slane %v113_v36, %v134_v16  ;;  %v187_v6 = vrot.slane %v127_v39, %v134_v16  ;;  %v191_v7 = vrot.slane %v129_v49, %v134_v16  ;;  %v195_v9 = vrot.slane %v131_v53, %v134_v16 }
  0x81   :  { %v2978_v28 = vpop.permute.xlu1 %224  ;;  %v2980_v29 = vpop.permute.xlu0 %214 }
  0x82   :  { %v229_v32 = vsub.f32 %v135_v23, %v2978_v28  ;;  %v232_v34 = vsub.f32 %v139_v25, %v2978_v28  ;;  %v235_v37 = vsub.f32 %v143_v31, %v2978_v28  ;;  %v227_v10 = vsub.f32 %v135_v23, %v2980_v29 }
  0x83   :  { %v230_v13 = vsub.f32 %v139_v25, %v2980_v29  ;;  %v233_v14 = vsub.f32 %v143_v31, %v2980_v29  ;;  %v236_v18 = vsub.f32 %v147_v54, %v2980_v29  ;;  %v238_v19 = vsub.f32 %v147_v54, %v2978_v28 }
  0x84   :  { %v277_v43 = vmul.f32 %v229_v32, %v229_v32  ;;  %v280_v46 = vmul.f32 %v232_v34, %v232_v34  ;;  %v283_v50 = vmul.f32 %v235_v37, %v235_v37  ;;  %v239_v22 = vsub.f32 %v151_v55, %v2980_v29 }
  0x85   :  { %v2985_v40 = vpop.permute.xlu0 %219  ;;  %v241_v16 = vsub.f32 %v151_v55, %v2978_v28  ;;  %v242_v24 = vsub.f32 %v155_v56, %v2980_v29  ;;  %v245_v26 = vsub.f32 %v159_v57, %v2980_v29  ;;  %v247_v34 = vsub.f32 %v159_v57, %v2978_v28 }
  0x86   :  { %v228_v44 = vsub.f32 %v135_v23, %v2985_v40  ;;  %v231_v47 = vsub.f32 %v139_v25, %v2985_v40  ;;  %v234_v51 = vsub.f32 %v143_v31, %v2985_v40  ;;  %v325_v58 = vmul.f32 -50.0, %v277_v43 }
  0x87   :  { %v328_v62 = vmul.f32 -50.0, %v280_v46  ;;  %v331_v2 = vmul.f32 -50.0, %v283_v50  ;;  %v237_v23 = vsub.f32 %v147_v54, %v2985_v40  ;;  %v244_v25 = vsub.f32 %v155_v56, %v2978_v28 }
  0x88   :  { %v276_v59 = vmul.f32 %v228_v44, %v228_v44  ;;  %v279_v63 = vmul.f32 %v231_v47, %v231_v47  ;;  %v282_v3 = vmul.f32 %v234_v51, %v234_v51  ;;  %v375_v11 = vmul.f32 1.442695, %v325_v58 }
  0x89   :  { %v381_v15 = vmul.f32 1.442695, %v328_v62  ;;  %v387_v20 = vmul.f32 1.442695, %v331_v2  ;;  %v240_v30 = vsub.f32 %v151_v55, %v2985_v40  ;;  %v243_v31 = vsub.f32 %v155_v56, %v2985_v40 }
  0x8a   :  { %v324_v12 = vmul.f32 -50.0, %v276_v59  ;;  %v327_v17 = vmul.f32 -50.0, %v279_v63  ;;  %v330_v21 = vmul.f32 -50.0, %v282_v3  ;;  %2728 = vpow2.f32 %v375_v11 }
  0x8b   :  { %2730 = vpow2.f32 %v381_v15  ;;  %v246_v33 = vsub.f32 %v159_v57, %v2985_v40  ;;  %v248_v36 = vsub.f32 %v163_v60, %v2980_v29  ;;  %v249_v37 = vsub.f32 %v163_v60, %v2985_v40 }
  0x8c   :  { %v373_v27 = vmul.f32 1.442695, %v324_v12  ;;  %v379_v32 = vmul.f32 1.442695, %v327_v17  ;;  %2732 = vpow2.f32 %v387_v20  ;;  %v385_v35 = vmul.f32 1.442695, %v330_v21 }
  0x8d   :  { %v250_v38 = vsub.f32 %v163_v60, %v2978_v28  ;;  %v251_v39 = vsub.f32 %v167_v61, %v2980_v29  ;;  %v252_v41 = vsub.f32 %v167_v61, %v2985_v40  ;;  %v253_v42 = vsub.f32 %v167_v61, %v2978_v28 }
  0x8e   :  { %2734 = vpow2.f32 %v373_v27  ;;  %v254_v43 = vsub.f32 %v171_v0, %v2980_v29  ;;  %v255_v44 = vsub.f32 %v171_v0, %v2985_v40  ;;  %v256_v45 = vsub.f32 %v171_v0, %v2978_v28 }
  0x8f   :  { %2736 = vpow2.f32 %v379_v32  ;;  %v257_v46 = vsub.f32 %v175_v1, %v2980_v29  ;;  %v258_v47 = vsub.f32 %v175_v1, %v2985_v40  ;;  %v259_v48 = vsub.f32 %v175_v1, %v2978_v28 }
  0x90   :  { %2738 = vpow2.f32 %v385_v35  ;;  %v260_v49 = vsub.f32 %v179_v4, %v2980_v29  ;;  %v261_v50 = vsub.f32 %v179_v4, %v2985_v40  ;;  %v262_v51 = vsub.f32 %v179_v4, %v2978_v28 }
  0x91   :  { %v263_v52 = vsub.f32 %v183_v5, %v2980_v29  ;;  %v264_v53 = vsub.f32 %v183_v5, %v2985_v40  ;;  %v265_v54 = vsub.f32 %v183_v5, %v2978_v28  ;;  %v266_v55 = vsub.f32 %v187_v6, %v2980_v29 }
  0x92   :  { %v267_v56 = vsub.f32 %v187_v6, %v2985_v40  ;;  %v268_v57 = vsub.f32 %v187_v6, %v2978_v28  ;;  %v269_v58 = vsub.f32 %v191_v7, %v2980_v29  ;;  %v270_v59 = vsub.f32 %v191_v7, %v2985_v40 }
  0x93   :  { %v271_v60 = vsub.f32 %v191_v7, %v2978_v28  ;;  %v272_v61 = vsub.f32 %v195_v9, %v2980_v29  ;;  %v273_v62 = vsub.f32 %v195_v9, %v2985_v40  ;;  %v274_v63 = vsub.f32 %v195_v9, %v2978_v28 }
  0x94   :  { %v3032_v0 = vpop.eup %2728  ;;  %v275_v1 = vmul.f32 %v227_v10, %v227_v10  ;;  %v278_v2 = vmul.f32 %v230_v13, %v230_v13  ;;  %v281_v3 = vmul.f32 %v233_v14, %v233_v14  ;;  %v284_v4 = vmul.f32 %v236_v18, %v236_v18 }
  0x95   :  { %v3034_v5 = vpop.eup %2730  ;;  %v285_v6 = vmul.f32 %v237_v23, %v237_v23  ;;  %v286_v11 = vmul.f32 %v238_v19, %v238_v19  ;;  %v287_v12 = vmul.f32 %v239_v22, %v239_v22  ;;  %v288_v15 = vmul.f32 %v240_v30, %v240_v30 }
  0x96   :  { %v3036_v17 = vpop.eup %2732  ;;  %v289_v7 = vmul.f32 %v241_v16, %v241_v16  ;;  %v290_v29 = vmul.f32 %v242_v24, %v242_v24  ;;  %v291_v20 = vmul.f32 %v243_v31, %v243_v31  ;;  %v292_v40 = vmul.f32 %v244_v25, %v244_v25 }
  0x97   :  { %v293_v21 = vmul.f32 %v245_v26, %v245_v26  ;;  %v294_v28 = vmul.f32 %v246_v33, %v246_v33  ;;  %v295_v9 = vmul.f32 %v247_v34, %v247_v34  ;;  %v296_v27 = vmul.f32 %v248_v36, %v248_v36 }
  0x98   :  { %v3038_v10 = vpop.eup %2734  ;;  %v297_v13 = vmul.f32 %v249_v37, %v249_v37  ;;  %v298_v14 = vmul.f32 %v250_v38, %v250_v38  ;;  %v299_v18 = vmul.f32 %v251_v39, %v251_v39  ;;  %v300_v32 = vmul.f32 %v252_v41, %v252_v41 }
  0x99   :  { %v3040_v23 = vpop.eup %2736  ;;  %v301_v19 = vmul.f32 %v253_v42, %v253_v42  ;;  %v302_v22 = vmul.f32 %v254_v43, %v254_v43  ;;  %v303_v30 = vmul.f32 %v255_v44, %v255_v44  ;;  %v304_v35 = vmul.f32 %v256_v45, %v256_v45 }
  0x9a   :  { %v3042_v16 = vpop.eup %2738  ;;  %v305_v24 = vmul.f32 %v257_v46, %v257_v46  ;;  %v306_v25 = vmul.f32 %v258_v47, %v258_v47  ;;  %v307_v26 = vmul.f32 %v259_v48, %v259_v48  ;;  %v308_v31 = vmul.f32 %v260_v49, %v260_v49 }
  0x9b   :  { %v309_v33 = vmul.f32 %v261_v50, %v261_v50  ;;  %v310_v34 = vmul.f32 %v262_v51, %v262_v51  ;;  %v3044_v36 = vmul.f32 %v263_v52, %v263_v52  ;;  %v3046_v37 = vmul.f32 %v264_v53, %v264_v53 }
  0x9c   :  { %v3048_v38 = vmul.f32 %v265_v54, %v265_v54  ;;  %v3050_v39 = vmul.f32 %v266_v55, %v266_v55  ;;  %v3052_v41 = vmul.f32 %v267_v56, %v267_v56  ;;  %v3054_v42 = vmul.f32 %v268_v57, %v268_v57 }
  0x9d   :  { %v3056_v43 = vmul.f32 %v269_v58, %v269_v58  ;;  %v323_v44 = vmul.f32 -50.0, %v275_v1  ;;  %v326_v45 = vmul.f32 -50.0, %v278_v2  ;;  %v329_v46 = vmul.f32 -50.0, %v281_v3 }
  0x9e   :  { %v3058_v47 = vmul.f32 %v270_v59, %v270_v59  ;;  %v3060_v48 = vmul.f32 %v271_v60, %v271_v60  ;;  %v3062_v49 = vmul.f32 %v272_v61, %v272_v61  ;;  %v332_v50 = vmul.f32 -50.0, %v284_v4 }
  0x9f   :  { %v3064_v51 = vmul.f32 %v273_v62, %v273_v62  ;;  %v333_v52 = vmul.f32 -50.0, %v285_v6  ;;  %v334_v53 = vmul.f32 -50.0, %v286_v11  ;;  %v335_v54 = vmul.f32 -50.0, %v287_v12 }
  0xa0   :  { %3493 = vst [vmem:[#allocation9_spill] sm:$0xff] %v3060_v48  ;;  %3494 = vst [vmem:[#allocation10_spill] sm:$0xff] %v3062_v49  ;;  %v336_v55 = vmul.f32 -50.0, %v288_v15  ;;  %v337_v56 = vmul.f32 -50.0, %v289_v7  ;;  %v338_v57 = vmul.f32 -50.0, %v290_v29  ;;  %v339_v58 = vmul.f32 -50.0, %v291_v20 }
  0xa1   :  { %v3066_v8 = vmul.f32 %v274_v63, %v274_v63  ;;  %v371_v1 = vmul.f32 1.442695, %v323_v44  ;;  %v377_v2 = vmul.f32 1.442695, %v326_v45  ;;  %v383_v59 = vmul.f32 1.442695, %v329_v46 }
  0xa2   :  { %v340_v3 = vmul.f32 -50.0, %v292_v40  ;;  %v341_v60 = vmul.f32 -50.0, %v293_v21  ;;  %v342_v48 = vmul.f32 -50.0, %v294_v28  ;;  %v389_v61 = vmul.f32 1.442695, %v332_v50 }
  0xa3   :  { %v343_v49 = vmul.f32 -50.0, %v295_v9  ;;  %v344_v4 = vmul.f32 -50.0, %v296_v27  ;;  %2740 = vpow2.f32 %v371_v1  ;;  %v391_v62 = vmul.f32 1.442695, %v333_v52 }
  0xa4   :  { %v345_v6 = vmul.f32 -50.0, %v297_v13  ;;  %v346_v11 = vmul.f32 -50.0, %v298_v14  ;;  %2742 = vpow2.f32 %v377_v2  ;;  %v393_v12 = vmul.f32 1.442695, %v334_v53 }
  0xa5   :  { %v347_v15 = vmul.f32 -50.0, %v299_v18  ;;  %v348_v7 = vmul.f32 -50.0, %v300_v32  ;;  %2744 = vpow2.f32 %v383_v59  ;;  %v395_v63 = vmul.f32 1.442695, %v335_v54 }
  0xa6   :  { %v349_v29 = vmul.f32 -50.0, %v301_v19  ;;  %v3068_v20 = vmul.f32 -50.0, %v302_v22  ;;  %2746 = vpow2.f32 %v389_v61  ;;  %v397_v40 = vmul.f32 1.442695, %v336_v55  ;;  %v576_v22 = vld [vmem:[%s3485_s2] sm:$0xff] }
  0xa7   :  { %v3070_v21 = vmul.f32 -50.0, %v303_v30  ;;  %v3072_v28 = vmul.f32 -50.0, %v304_v35  ;;  %2748 = vpow2.f32 %v391_v62  ;;  %v399_v9 = vmul.f32 1.442695, %v337_v56  ;;  %v577_v30 = vld [vmem:[%s3485_s2 + $0x8] sm:$0xff] }
  0xa8   :  { %v3074_v27 = vmul.f32 -50.0, %v305_v24  ;;  %v3076_v13 = vmul.f32 -50.0, %v306_v25  ;;  %2750 = vpow2.f32 %v393_v12  ;;  %v401_v14 = vmul.f32 1.442695, %v338_v57 }
  0xa9   :  { %v3078_v18 = vmul.f32 -50.0, %v307_v26  ;;  %v3080_v32 = vmul.f32 -50.0, %v308_v31  ;;  %2752 = vpow2.f32 %v395_v63  ;;  %v403_v19 = vmul.f32 1.442695, %v339_v58 }
  0xaa   :  { %v3088_v35 = vmul.f32 -50.0, %v309_v33  ;;  %v3090_v24 = vmul.f32 -50.0, %v310_v34  ;;  %2754 = vpow2.f32 %v397_v40  ;;  %v405_v25 = vmul.f32 1.442695, %v340_v3  ;;  %v2308_v33 = vld [vmem:[%s3485_s2 + $0x18] sm:$0xff]  ;;  %v2309_v34 = vld [vmem:[%s3485_s2 + $0x20] sm:$0xff] }
  0xab   :  { %v3093_v26 = vmul.f32 -50.0, %v3044_v36  ;;  %2756 = vpow2.f32 %v399_v9  ;;  %v407_v31 = vmul.f32 1.442695, %v341_v60  ;;  %v482_v44 = vadd.f32 %v3040_v23, %v3038_v10 }
  0xac   :  { %2758 = vpow2.f32 %v401_v14  ;;  %v409_v45 = vmul.f32 1.442695, %v342_v48  ;;  %v411_v46 = vmul.f32 1.442695, %v343_v49  ;;  %v2652_v50 = vpack.c.bf16 %v577_v30, %v576_v22 }
  0xad   :  { %v2741_v52 = vpop.eup %2740  ;;  %2760 = vpow2.f32 %v403_v19  ;;  %v413_v36 = vmul.f32 1.442695, %v344_v4  ;;  %v415_v53 = vmul.f32 1.442695, %v345_v6  ;;  %v417_v54 = vmul.f32 1.442695, %v346_v11 }
  0xae   :  { %v2743_v55 = vpop.eup %2742  ;;  %2762 = vpow2.f32 %v405_v25  ;;  %v419_v10 = vmul.f32 1.442695, %v347_v15  ;;  %v421_v23 = vmul.f32 1.442695, %v348_v7  ;;  %v423_v48 = vmul.f32 1.442695, %v349_v29 }
  0xaf   :  { %v2745_v49 = vpop.eup %2744  ;;  %2764 = vpow2.f32 %v407_v31  ;;  %v467_v56 = vadd.f32 %v2743_v55, %v2741_v52  ;;  %v483_v57 = vadd.f32 %v3042_v16, %v482_v44  ;;  %v498_v58 = vsel %vm497_vm0, %v3032_v0, 0.0  ;;  %v578_v15 = vld [vmem:[%s3485_s2 + $0x10] sm:$0x1f] }
  0xb0   :  { %v2747_v1 = vpop.eup %2746  ;;  %2766 = vpow2.f32 %v409_v45  ;;  %v499_v2 = vsel %vm497_vm0, %v3034_v5, 0.0  ;;  %v501_v59 = vsel %vm497_vm0, %v3036_v17, 0.0  ;;  %v2912_v4 = vmov 0.0|0.0  }
  0xb1   :  { %v2749_v3 = vpop.eup %2748  ;;  %2768 = vpow2.f32 %v411_v46  ;;  %v468_v60 = vadd.f32 %v2745_v49, %v467_v56  ;;  %v500_v61 = vadd.f32 %v499_v2, %v498_v58  ;;  %2651 = vmatprep.subr.bf16.mxu1 %v2912_v4  ;;  %2648 = vmatprep.subr.bf16.mxu0 %v2912_v4  ;;  %v2649_v16 = vpack.c.bf16 %v2309_v34, %v2308_v33 }
  0xb2   :  { %v2751_v62 = vpop.eup %2750  ;;  %2770 = vpow2.f32 %v413_v36  ;;  %v484_v0 = vadd.f32 %v2749_v3, %v483_v57  ;;  %2653 = vmatpush3.bf16.msra.mxu1 %v2652_v50  ;;  %v2913_v12 = vmov 0.0   ;;  %v360_v63 = vmul.f32 -50.0, %v3046_v37  ;;  %v3495_v3 = vld [vmem:[#allocation9_spill] sm:$0xff] }
  0xb3   :  { %v2753_v6 = vpop.eup %2752  ;;  %2772 = vpow2.f32 %v415_v53  ;;  %v469_v5 = vadd.f32 %v2747_v1, %v468_v60  ;;  %v502_v11 = vadd.f32 %v501_v59, %v500_v61  ;;  %v503_v17 = vsel %vm497_vm0, %v2751_v62, 0.0  ;;  %2650 = vmatpush3.bf16.msra.mxu0 %v2649_v16  ;;  %2486 = vmatprep.subr.mxu1 %v2913_v12 }
  0xb4   :  { %v2755_v7 = vpop.eup %2754  ;;  %2774 = vpow2.f32 %v417_v54  ;;  %v425_v29 = vmul.f32 1.442695, %v3068_v20  ;;  %v427_v40 = vmul.f32 1.442695, %v3070_v21  ;;  %2488 = vmatprep.mubr.msk.f32.mxu1 %vm2914_vm1, %v2913_v12  ;;  %2477 = vmatprep.subr.mxu0 %v2913_v12  ;;  %v361_v30 = vmul.f32 -50.0, %v3048_v38 }
  0xb5   :  { %v2757_v9 = vpop.eup %2756  ;;  %2776 = vpow2.f32 %v419_v10  ;;  %v470_v14 = vadd.f32 %v2753_v6, %v469_v5  ;;  %v485_v19 = vadd.f32 %v2755_v7, %v484_v0  ;;  %v504_v22 = vadd.f32 %v503_v17, %v502_v11  ;;  %2479 = vmatprep.mubr.msk.f32.mxu0 %vm2914_vm1, %v2913_v12  ;;  %v3496_v6 = vld [vmem:[#allocation10_spill] sm:$0xff] }
  0xb6   :  { %v2759_v37 = vpop.eup %2758  ;;  %2778 = vpow2.f32 %v421_v23  ;;  %v429_v20 = vmul.f32 1.442695, %v3072_v28  ;;  %v505_v21 = vsel %vm497_vm0, %v2757_v9, 0.0  ;;  %2487 = vmatpush3.msk.msra.mxu1 %vm497_vm0, %v578_v15  ;;  %v431_v31 = vmul.f32 1.442695, %v3074_v27 }
  0xb7   :  { %v2761_v25 = vpop.eup %2760  ;;  %2780 = vpow2.f32 %v423_v48  ;;  %v471_v44 = vadd.f32 %v2759_v37, %v470_v14  ;;  %v506_v45 = vadd.f32 %v505_v21, %v504_v22  ;;  %2657 = vmatprep.subr.bf16.mxu1 %v2912_v4  ;;  %v362_v50 = vmul.f32 -50.0, %v3050_v39 }
  0xb8   :  { %v2763_v46 = vpop.eup %2762  ;;  %2782 = vpow2.f32 %v425_v29  ;;  %v433_v38 = vmul.f32 1.442695, %v3076_v13  ;;  %v486_v33 = vadd.f32 %v2761_v25, %v485_v19  ;;  %v363_v34 = vmul.f32 -50.0, %v3052_v41 }
  0xb9   :  { %v2765_v28 = vpop.eup %2764  ;;  %2784 = vpow2.f32 %v427_v40  ;;  %v435_v52 = vmul.f32 1.442695, %v3078_v18  ;;  %v507_v36 = vsel %vm497_vm0, %v2763_v46, 0.0  ;;  %v437_v53 = vmul.f32 1.442695, %v3080_v32 }
  0xba   :  { %v2767_v27 = vpop.eup %2766  ;;  %2786 = vpow2.f32 %v429_v20  ;;  %v472_v54 = vadd.f32 %v2765_v28, %v471_v44  ;;  %v508_v55 = vadd.f32 %v507_v36, %v506_v45  ;;  %v364_v39 = vmul.f32 -50.0, %v3054_v42 }
  0xbb   :  { %v2769_v10 = vpop.eup %2768  ;;  %2788 = vpow2.f32 %v431_v31  ;;  %v439_v13 = vmul.f32 1.442695, %v3088_v35  ;;  %v487_v23 = vadd.f32 %v2767_v27, %v486_v33  ;;  %v365_v41 = vmul.f32 -50.0, %v3056_v43 }
  0xbc   :  { %v2771_v48 = vpop.eup %2770  ;;  %2790 = vpow2.f32 %v433_v38  ;;  %v441_v18 = vmul.f32 1.442695, %v3090_v24  ;;  %v509_v49 = vsel %vm497_vm0, %v2769_v10, 0.0  ;;  %v443_v32 = vmul.f32 1.442695, %v3093_v26 }
  0xbd   :  { %v2773_v56 = vpop.eup %2772  ;;  %2792 = vpow2.f32 %v435_v52  ;;  %v473_v57 = vadd.f32 %v2771_v48, %v472_v54  ;;  %v510_v58 = vadd.f32 %v509_v49, %v508_v55  ;;  %v366_v42 = vmul.f32 -50.0, %v3058_v47 }
  0xbe   :  { %v2775_v1 = vpop.eup %2774  ;;  %2794 = vpow2.f32 %v437_v53  ;;  %v445_v35 = vmul.f32 1.442695, %v360_v63  ;;  %v488_v2 = vadd.f32 %v2773_v56, %v487_v23  ;;  %v367_v43 = vmul.f32 -50.0, %v3495_v3 }
  0xbf   :  { %v2777_v59 = vpop.eup %2776  ;;  %2796 = vpow2.f32 %v439_v13  ;;  %v447_v60 = vmul.f32 1.442695, %v361_v30  ;;  %v511_v24 = vsel %vm497_vm0, %v2775_v1, 0.0  ;;  %v449_v16 = vmul.f32 1.442695, %v362_v50 }
  0xc0   :  { %v2779_v61 = vpop.eup %2778  ;;  %2798 = vpow2.f32 %v441_v18  ;;  %v474_v62 = vadd.f32 %v2777_v59, %v473_v57  ;;  %v512_v26 = vadd.f32 %v511_v24, %v510_v58  ;;  %v368_v5 = vmul.f32 -50.0, %v3496_v6 }
  0xc1   :  { %v2781_v0 = vpop.eup %2780  ;;  %2800 = vpow2.f32 %v443_v32  ;;  %v451_v47 = vmul.f32 1.442695, %v363_v34  ;;  %v489_v11 = vadd.f32 %v2779_v61, %v488_v2  ;;  %v369_v15 = vmul.f32 -50.0, %v3064_v51 }
  0xc2   :  { %v2783_v17 = vpop.eup %2782  ;;  %2802 = vpow2.f32 %v445_v35  ;;  %v453_v7 = vmul.f32 1.442695, %v364_v39  ;;  %v513_v63 = vsel %vm497_vm0, %v2781_v0, 0.0  ;;  %v455_v40 = vmul.f32 1.442695, %v365_v41 }
  0xc3   :  { %v2785_v29 = vpop.eup %2784  ;;  %2804 = vpow2.f32 %v447_v60  ;;  %v475_v9 = vadd.f32 %v2783_v17, %v474_v62  ;;  %v514_v14 = vadd.f32 %v513_v63, %v512_v26  ;;  %v370_v22 = vmul.f32 -50.0, %v3066_v8 }
  0xc4   :  { %v2787_v19 = vpop.eup %2786  ;;  %2806 = vpow2.f32 %v449_v16  ;;  %v457_v37 = vmul.f32 1.442695, %v366_v42  ;;  %v490_v30 = vadd.f32 %v2785_v29, %v489_v11  ;;  %v459_v21 = vmul.f32 1.442695, %v367_v43 }
  0xc5   :  { %v2789_v20 = vpop.eup %2788  ;;  %2808 = vpow2.f32 %v451_v47  ;;  %v515_v51 = vsel %vm497_vm0, %v2787_v19, 0.0  ;;  %v461_v31 = vmul.f32 1.442695, %v368_v5  ;;  %v463_v50 = vmul.f32 1.442695, %v369_v15 }
  0xc6   :  { %v2791_v25 = vpop.eup %2790  ;;  %2810 = vpow2.f32 %v453_v7  ;;  %v476_v44 = vadd.f32 %v2789_v20, %v475_v9  ;;  %v516_v45 = vadd.f32 %v515_v51, %v514_v14  ;;  %v465_v8 = vmul.f32 1.442695, %v370_v22  ;;  %v2310_v20 = vld [vmem:[%s3485_s2 + $0x28] sm:$0x1f] }
  0xc7   :  { %v2793_v46 = vpop.eup %2792  ;;  %2812 = vpow2.f32 %v455_v40  ;;  %v491_v38 = vadd.f32 %v2791_v25, %v490_v30  ;;  %2478 = vmatpush3.msk.msra.mxu0 %vm497_vm0, %v2310_v20  ;;  %v2320_v51 = vld [vmem:[%s3485_s2 + $0x48] sm:$0xff]  ;;  %v2321_v25 = vld [vmem:[%s3485_s2 + $0x50] sm:$0xff] }
  0xc8   :  { %v2795_v33 = vpop.eup %2794  ;;  %2814 = vpow2.f32 %v457_v37  ;;  %v517_v28 = vsel %vm497_vm0, %v2793_v46, 0.0  ;;  %2654 = vmatprep.subr.bf16.mxu0 %v2912_v4 }
  0xc9   :  { %v2797_v34 = vpop.eup %2796  ;;  %2816 = vpow2.f32 %v459_v21  ;;  %v477_v52 = vadd.f32 %v2795_v33, %v476_v44  ;;  %v518_v36 = vadd.f32 %v517_v28, %v516_v45  ;;  %v2315_v44 = vld [vmem:[%s3485_s2 + $0x30] sm:$0xff]  ;;  %v2316_v45 = vld [vmem:[%s3485_s2 + $0x38] sm:$0xff]  ;;  %v2326_v28 = vld [vmem:[%s3485_s2 + $0x68] sm:$0xff] }
  0xca   :  { %v2799_v27 = vpop.eup %2798  ;;  %2818 = vpow2.f32 %v461_v31  ;;  %v492_v53 = vadd.f32 %v2797_v34, %v491_v38  ;;  %v2658_v31 = vpack.c.bf16 %v2321_v25, %v2320_v51  ;;  %v2322_v33 = vld [vmem:[%s3485_s2 + $0x58] sm:$0x1f]  ;;  %v2317_v34 = vld [vmem:[%s3485_s2 + $0x40] sm:$0x1f]  ;;  %v2372_v51 = vld [vmem:[%s3485_s2 + $0x148] sm:$0x1f] }
  0xcb   :  { %v2801_v54 = vpop.eup %2800  ;;  %2820 = vpow2.f32 %v463_v50  ;;  %v519_v55 = vsel %vm497_vm0, %v2799_v27, 0.0  ;;  %v2655_v50 = vpack.c.bf16 %v2316_v45, %v2315_v44  ;;  %v2380_v25 = vld [vmem:[%s3485_s2 + $0x168] sm:$0xff] }
  0xcc   :  { %v2803_v10 = vpop.eup %2802  ;;  %2822 = vpow2.f32 %v465_v8  ;;  %v478_v39 = vadd.f32 %v2801_v54, %v477_v52  ;;  %v520_v13 = vadd.f32 %v519_v55, %v518_v36  ;;  %v2325_v8 = vld [vmem:[%s3485_s2 + $0x60] sm:$0xff]  ;;  %v2330_v52 = vld [vmem:[%s3485_s2 + $0x78] sm:$0xff]  ;;  %v2335_v55 = vld [vmem:[%s3485_s2 + $0x90] sm:$0xff] }
  0xcd   :  { %v2805_v23 = vpop.eup %2804  ;;  %v493_v48 = vadd.f32 %v2803_v10, %v492_v53  ;;  %v2331_v36 = vld [vmem:[%s3485_s2 + $0x80] sm:$0xff]  ;;  %v2661_v53 = vpack.c.bf16 %v2326_v28, %v2325_v8  ;;  %v2336_v10 = vld [vmem:[%s3485_s2 + $0x98] sm:$0xff] }
  0xce   :  { %v2807_v41 = vpop.eup %2806  ;;  %v521_v18 = vsel %vm497_vm0, %v2805_v23, 0.0  ;;  %v2664_v54 = vpack.c.bf16 %v2331_v36, %v2330_v52  ;;  %v2667_v23 = vpack.c.bf16 %v2336_v10, %v2335_v55  ;;  %v1981_v28 = vld [vmem:[%s3487_s4] sm:$0xff]  ;;  %v1983_v36 = vld [vmem:[%s3487_s4 + $0x10] sm:$0x1] }
  0xcf   :  { %v2809_v49 = vpop.eup %2808  ;;  %v479_v56 = vadd.f32 %v2807_v41, %v478_v39  ;;  %v522_v32 = vadd.f32 %v521_v18, %v520_v13  ;;  %v2327_v13 = vld [vmem:[%s3485_s2 + $0x70] sm:$0x1f]  ;;  %v2340_v41 = vld [vmem:[%s3485_s2 + $0xa8] sm:$0xff] }
  0xd0   :  { %v2811_v57 = vpop.eup %2810  ;;  %v494_v58 = vadd.f32 %v2809_v49, %v493_v48  ;;  %v2332_v48 = vld [vmem:[%s3485_s2 + $0x88] sm:$0x1f]  ;;  %v2341_v18 = vld [vmem:[%s3485_s2 + $0xb0] sm:$0xff] }
  0xd1   :  { %v2813_v1 = vpop.eup %2812  ;;  %v523_v42 = vsel %vm497_vm0, %v2811_v57, 0.0  ;;  %v2345_v57 = vld [vmem:[%s3485_s2 + $0xc0] sm:$0xff] }
  0xd2   :  { %v2815_v35 = vpop.eup %2814  ;;  %v480_v2 = vadd.f32 %v2813_v1, %v479_v56  ;;  %v524_v59 = vadd.f32 %v523_v42, %v522_v32  ;;  %v2670_v56 = vpack.c.bf16 %v2341_v18, %v2340_v41  ;;  %v2337_v32 = vld [vmem:[%s3485_s2 + $0xa0] sm:$0x1f] }
  0xd3   :  { %v2817_v3 = vpop.eup %2816  ;;  %v495_v43 = vadd.f32 %v2815_v35, %v494_v58  ;;  %v2346_v58 = vld [vmem:[%s3485_s2 + $0xc8] sm:$0xff]  ;;  %v2342_v35 = vld [vmem:[%s3485_s2 + $0xb8] sm:$0x1f] }
  0xd4   :  { %v2819_v60 = vpop.eup %2818  ;;  %v525_v24 = vsel %vm497_vm0, %v2817_v3, 0.0  ;;  %v2673_v42 = vpack.c.bf16 %v2346_v58, %v2345_v57 }
  0xd5   :  { %v2821_v61 = vpop.eup %2820  ;;  %v481_v16 = vadd.f32 %v2819_v60, %v480_v2  ;;  %v526_v62 = vadd.f32 %v525_v24, %v524_v59  ;;  %v2350_v2 = vld [vmem:[%s3485_s2 + $0xd8] sm:$0xff]  ;;  %v2351_v59 = vld [vmem:[%s3485_s2 + $0xe0] sm:$0xff]  ;;  %v2347_v60 = vld [vmem:[%s3485_s2 + $0xd0] sm:$0x1f] }
  0xd6   :  { %v2823_v26 = vpop.eup %2822  ;;  %v496_v0 = vadd.f32 %v2821_v61, %v495_v43  ;;  %v2676_v43 = vpack.c.bf16 %v2351_v59, %v2350_v2  ;;  %v2355_v24 = vld [vmem:[%s3485_s2 + $0xf0] sm:$0xff]  ;;  %v2356_v61 = vld [vmem:[%s3485_s2 + $0xf8] sm:$0xff] }
  0xd7   :  { %v529_v6 = vmax.f32 %v481_v16, 1e-10  ;;  %v527_v5 = vsel %vm497_vm0, %v2823_v26, 0.0  ;;  %v2352_v26 = vld [vmem:[%s3485_s2 + $0xe8] sm:$0x1f] }
  0xd8   :  { %v530_v47 = vmax.f32 %v496_v0, 1e-10  ;;  %v528_v11 = vadd.f32 %v527_v5, %v526_v62  ;;  %v2679_v62 = vpack.c.bf16 %v2356_v61, %v2355_v24  ;;  %v2360_v0 = vld [vmem:[%s3485_s2 + $0x108] sm:$0xff] }
  0xd9   :  { %2824 = vlog2.f32 %v529_v6  ;;  %v2361_v6 = vld [vmem:[%s3485_s2 + $0x110] sm:$0xff] }
  0xda   :  { %2826 = vlog2.f32 %v530_v47  ;;  %v531_v17 = vmax.f32 %v528_v11, 1e-10  ;;  %v2682_v47 = vpack.c.bf16 %v2361_v6, %v2360_v0  ;;  %v2357_v11 = vld [vmem:[%s3485_s2 + $0x100] sm:$0x1f] }
  0xdc   :  { %2828 = vlog2.f32 %v531_v17  ;;  %v2365_v17 = vld [vmem:[%s3485_s2 + $0x120] sm:$0xff] }
  0xe3   :  { %v2825_v15 = vpop.eup %2824 }
  0xe4   :  { %v2827_v7 = vpop.eup %2826  ;;  %v533_v63 = vmul.f32 0.6931472, %v2825_v15  ;;  %v2366_v15 = vld [vmem:[%s3485_s2 + $0x128] sm:$0xff] }
  0xe5   :  { %v535_v29 = vmul.f32 0.6931472, %v2827_v7 }
  0xe6   :  { %v2829_v40 = vpop.eup %2828  ;;  %v538_v9 = vmul.f32 0.01, %v533_v63  ;;  %v2685_v63 = vpack.c.bf16 %v2366_v15, %v2365_v17 }
  0xe7   :  { %v539_v14 = vmul.f32 0.01, %v535_v29  ;;  %v537_v19 = vmul.f32 0.6931472, %v2829_v40  ;;  %v2362_v29 = vld [vmem:[%s3485_s2 + $0x118] sm:$0x1f] }
  0xe8   :  { %2830 = vtanh.f32 %v538_v9  ;;  %v2370_v40 = vld [vmem:[%s3485_s2 + $0x138] sm:$0xff]  ;;  %v2371_v9 = vld [vmem:[%s3485_s2 + $0x140] sm:$0xff] }
  0xe9   :  { %2832 = vtanh.f32 %v539_v14  ;;  %v540_v22 = vmul.f32 0.01, %v537_v19  ;;  %v2688_v19 = vpack.c.bf16 %v2371_v9, %v2370_v40 }
  0xeb   :  { %2834 = vtanh.f32 %v540_v22  ;;  %v2367_v22 = vld [vmem:[%s3485_s2 + $0x130] sm:$0x1f] }
  0xf2   :  { %v2831_v37 = vpop.eup %2830 }
  0xf3   :  { %544 = vxpose.xlu1.b32.start [1/3] (short) %v2831_v37, 128  ;;  %v2833_v30 = vpop.eup %2832  ;;  %v2375_v37 = vld [vmem:[%s3485_s2 + $0x150] sm:$0xff] }
  0xf5   :  { %v2835_v21 = vpop.eup %2834 }
  0xf7   :  { %545 = vxpose.xlu1.b32.cont [2/3] (short) %v2833_v30, 128  ;;  %v2376_v30 = vld [vmem:[%s3485_s2 + $0x158] sm:$0xff] }
  0xfb   :  { %546 = vxpose.xlu1.b32.end [3/3] (short) %v2835_v21, 128  ;;  %v2691_v21 = vpack.c.bf16 %v2376_v30, %v2375_v37  ;;  %v2385_v30 = vld [vmem:[%s3486_s3] ss:$0 sm:$0xff] }
 0x173   :  { %v560_v46 = vpop.trf.xlu1 }
 0x174   :  { %2489 = vmatmul.mubr.msk.f32.vlgmr.msra.gmra.mrb[0].mxu1 %vm583_vm2, %v560_v46  ;;  %v2377_v46 = vld [vmem:[%s3485_s2 + $0x160] sm:$0x1f] }
 0x175   :  { %2659 = vmatpush3.bf16.msra.mxu1 %v2658_v31  ;;  %2506 = vmatprep.mubr.msk.f32.mxu1 %vm2914_vm1, %v2913_v12  ;;  %v2381_v31 = vld [vmem:[%s3485_s2 + $0x170] sm:$0xff] }
 0x176   :  { %2504 = vmatprep.subr.mxu1 %v2913_v12  ;;  %v2694_v45 = vpack.c.bf16 %v2381_v31, %v2380_v25  ;;  %v2386_v25 = vld [vmem:[%s3486_s3 + $0x1] ss:$0 sm:$0xff] }
 0x177   :  { %v561_v38 = vpop.trf.xlu1 }
 0x178   :  { %2480 = vmatmul.mubr.msk.f32.vlgmr.msra.gmra.mrb[0].mxu0 %vm583_vm2, %v561_v38  ;;  %v2382_v38 = vld [vmem:[%s3485_s2 + $0x178] sm:$0x1f] }
 0x179   :  { %2656 = vmatpush3.bf16.msra.mxu0 %v2655_v50  ;;  %2497 = vmatprep.mubr.msk.f32.mxu0 %vm2914_vm1, %v2913_v12 }
 0x17a   :  { %2495 = vmatprep.subr.mxu0 %v2913_v12  ;;  %2505 = vmatpush3.msk.msra.mxu1 %vm497_vm0, %v2322_v33 }
 0x17b   :  { %v562_v27 = vpop.trf.xlu1  ;;  %2663 = vmatprep.subr.bf16.mxu1 %v2912_v4 }
 0x17d   :  { %2496 = vmatpush3.msk.msra.mxu0 %vm497_vm0, %v2317_v34  ;;  %v1982_v34 = vld [vmem:[%s3487_s4 + $0x8] sm:$0xff] }
 0x17e   :  { %2498 = vmatmul.mubr.msk.f32.vlgmr.msra.gmra.mrb[2].mxu0 %vm583_vm2, %v562_v27  ;;  %2660 = vmatprep.subr.bf16.mxu0 %v2912_v4  ;;  %v2697_v52 = vpack.c.bf16 %v1982_v34, %v1981_v28  ;;  %v1985_v27 = vld [vmem:[%s3488_s5] sm:$0x3] }
 0x17f   :  { %2662 = vmatpush3.bf16.msra.mxu0 %v2661_v53  ;;  %v563_v39 = vpop.trf.xlu1  ;;  %2515 = vmatprep.mubr.msk.f32.mxu0 %vm2914_vm1, %v2913_v12 }
 0x180   :  { %2507 = vmatmul.mubr.msk.f32.vlgmr.msra.gmra.mrb[2].mxu1 %vm583_vm2, %v563_v39  ;;  %2513 = vmatprep.subr.mxu0 %v2913_v12 }
 0x181   :  { %2665 = vmatpush3.bf16.msra.mxu1 %v2664_v54  ;;  %2524 = vmatprep.mubr.msk.f32.mxu1 %vm2914_vm1, %v2913_v12 }
 0x182   :  { %2522 = vmatprep.subr.mxu1 %v2913_v12 }
 0x183   :  { %2514 = vmatpush3.msk.msra.mxu0 %vm497_vm0, %v2327_v13  ;;  %v564_v49 = vpop.trf.xlu1 }
 0x184   :  { %2516 = vmatmul.mubr.msk.f32.vlgmr.msra.gmra.mrb[4].mxu0 %vm583_vm2, %v564_v49  ;;  %2666 = vmatprep.subr.bf16.mxu0 %v2912_v4 }
 0x185   :  { %2523 = vmatpush3.msk.msra.mxu1 %vm497_vm0, %v2332_v48  ;;  %2668 = vmatpush3.bf16.msra.mxu0 %v2667_v23 }
 0x186   :  { %2531 = vmatprep.subr.mxu0 %v2913_v12  ;;  %2669 = vmatprep.subr.bf16.mxu1 %v2912_v4 }
 0x187   :  { %v565_v1 = vpop.trf.xlu1  ;;  %2533 = vmatprep.mubr.msk.f32.mxu0 %vm2914_vm1, %v2913_v12 }
 0x188   :  { %2525 = vmatmul.mubr.msk.f32.vlgmr.msra.gmra.mrb[4].mxu1 %vm583_vm2, %v565_v1 }
 0x189   :  { %2532 = vmatpush3.msk.msra.mxu0 %vm497_vm0, %v2337_v32  ;;  %2671 = vmatpush3.bf16.msra.mxu1 %v2670_v56 }
 0x18a   :  { %2540 = vmatprep.subr.mxu1 %v2913_v12  ;;  %2672 = vmatprep.subr.bf16.mxu0 %v2912_v4 }
 0x18b   :  { %v566_v3 = vpop.trf.xlu1  ;;  %2542 = vmatprep.mubr.msk.f32.mxu1 %vm2914_vm1, %v2913_v12 }
 0x18c   :  { %2534 = vmatmul.mubr.msk.f32.vlgmr.msra.gmra.mrb[6].mxu0 %vm583_vm2, %v566_v3 }
 0x18d   :  { %2541 = vmatpush3.msk.msra.mxu1 %vm497_vm0, %v2342_v35  ;;  %2674 = vmatpush3.bf16.msra.mxu0 %v2673_v42 }
 0x18e   :  { %2549 = vmatprep.subr.mxu0 %v2913_v12  ;;  %2675 = vmatprep.subr.bf16.mxu1 %v2912_v4 }
 0x18f   :  { %v567_v16 = vpop.trf.xlu1  ;;  %2551 = vmatprep.mubr.msk.f32.mxu0 %vm2914_vm1, %v2913_v12 }
 0x190   :  { %2543 = vmatmul.mubr.msk.f32.vlgmr.msra.gmra.mrb[6].mxu1 %vm583_vm2, %v567_v16 }
 0x191   :  { %2550 = vmatpush3.msk.msra.mxu0 %vm497_vm0, %v2347_v60  ;;  %2677 = vmatpush3.bf16.msra.mxu1 %v2676_v43 }
 0x192   :  { %2558 = vmatprep.subr.mxu1 %v2913_v12  ;;  %2678 = vmatprep.subr.bf16.mxu0 %v2912_v4 }
 0x193   :  { %v568_v5 = vpop.trf.xlu1  ;;  %2560 = vmatprep.mubr.msk.f32.mxu1 %vm2914_vm1, %v2913_v12 }
 0x194   :  { %2552 = vmatmul.mubr.msk.f32.vlgmr.msra.gmra.mrb[8].mxu0 %vm583_vm2, %v568_v5 }
 0x195   :  { %2559 = vmatpush3.msk.msra.mxu1 %vm497_vm0, %v2352_v26  ;;  %2680 = vmatpush3.bf16.msra.mxu0 %v2679_v62 }
 0x196   :  { %2567 = vmatprep.subr.mxu0 %v2913_v12  ;;  %2681 = vmatprep.subr.bf16.mxu1 %v2912_v4 }
 0x197   :  { %v569_v7 = vpop.trf.xlu1  ;;  %2569 = vmatprep.mubr.msk.f32.mxu0 %vm2914_vm1, %v2913_v12 }
 0x198   :  { %2561 = vmatmul.mubr.msk.f32.vlgmr.msra.gmra.mrb[8].mxu1 %vm583_vm2, %v569_v7 }
 0x199   :  { %2568 = vmatpush3.msk.msra.mxu0 %vm497_vm0, %v2357_v11  ;;  %2683 = vmatpush3.bf16.msra.mxu1 %v2682_v47 }
 0x19a   :  { %2576 = vmatprep.subr.mxu1 %v2913_v12  ;;  %2684 = vmatprep.subr.bf16.mxu0 %v2912_v4 }
 0x19b   :  { %v570_v14 = vpop.trf.xlu1  ;;  %2578 = vmatprep.mubr.msk.f32.mxu1 %vm2914_vm1, %v2913_v12 }
 0x19c   :  { %2570 = vmatmul.mubr.msk.f32.vlgmr.msra.gmra.mrb[10].mxu0 %vm583_vm2, %v570_v14 }
 0x19d   :  { %2577 = vmatpush3.msk.msra.mxu1 %vm497_vm0, %v2362_v29  ;;  %2686 = vmatpush3.bf16.msra.mxu0 %v2685_v63 }
 0x19e   :  { %2585 = vmatprep.subr.mxu0 %v2913_v12  ;;  %2687 = vmatprep.subr.bf16.mxu1 %v2912_v4 }
 0x19f   :  { %v571_v20 = vpop.trf.xlu1  ;;  %2587 = vmatprep.mubr.msk.f32.mxu0 %vm2914_vm1, %v2913_v12 }
 0x1a0   :  { %2579 = vmatmul.mubr.msk.f32.vlgmr.msra.gmra.mrb[10].mxu1 %vm583_vm2, %v571_v20 }
 0x1a1   :  { %2586 = vmatpush3.msk.msra.mxu0 %vm497_vm0, %v2367_v22  ;;  %2689 = vmatpush3.bf16.msra.mxu1 %v2688_v19 }
 0x1a2   :  { %2594 = vmatprep.subr.mxu1 %v2913_v12  ;;  %2690 = vmatprep.subr.bf16.mxu0 %v2912_v4 }
 0x1a3   :  { %v572_v44 = vpop.trf.xlu1  ;;  %2596 = vmatprep.mubr.msk.f32.mxu1 %vm2914_vm1, %v2913_v12 }
 0x1a4   :  { %2588 = vmatmul.mubr.msk.f32.vlgmr.msra.gmra.mrb[12].mxu0 %vm583_vm2, %v572_v44 }
 0x1a5   :  { %2595 = vmatpush3.msk.msra.mxu1 %vm497_vm0, %v2372_v51  ;;  %2692 = vmatpush3.bf16.msra.mxu0 %v2691_v21 }
 0x1a6   :  { %2693 = vmatprep.subr.bf16.mxu1 %v2912_v4  ;;  %2603 = vmatprep.subr.mxu0 %v2913_v12 }
 0x1a7   :  { %v573_v50 = vpop.trf.xlu1  ;;  %2605 = vmatprep.mubr.msk.f32.mxu0 %vm2914_vm1, %v2913_v12 }
 0x1a8   :  { %2597 = vmatmul.mubr.msk.f32.vlgmr.msra.gmra.mrb[12].mxu1 %vm583_vm2, %v573_v50 }
 0x1a9   :  { %2695 = vmatpush3.bf16.msra.mxu1 %v2694_v45  ;;  %2604 = vmatpush3.msk.msra.mxu0 %vm497_vm0, %v2377_v46  ;;  %v2069_v46 = vld [vmem:[%s3486_s3 + $0x5] sm:$0x1] }
 0x1aa   :  { %2612 = vmatprep.subr.mxu1 %v2913_v12  ;;  %2614 = vmatprep.mubr.msk.f32.mxu1 %vm2914_vm1, %v2913_v12  ;;  %v2070_v50 = vsub.f32 0.0, %v2069_v46 }
 0x1ab   :  { %v574_v33 = vpop.trf.xlu1  ;;  %2696 = vmatprep.subr.bf16.mxu0 %v2912_v4 }
 0x1ac   :  { %2606 = vmatmul.mubr.msk.f32.vlgmr.msra.gmra.mrb[14].mxu0 %vm583_vm2, %v574_v33 }
 0x1ad   :  { %2613 = vmatpush3.msk.msra.mxu1 %vm497_vm0, %v2382_v38  ;;  %2623 = vmatprep.mubr.msk.f32.mxu0 %vm2914_vm1, %v2913_v12  ;;  %v2071_v38 = vmul.f32 1.442695, %v2070_v50  ;;  %v3497_v50 = vld [vmem:[#allocation8_spill] sm:$0xff] }
 0x1ae   :  { %2699 = vmatprep.subr.bf16.mxu1 %v2912_v4  ;;  %2698 = vmatpush3.bf16.msra.mxu0 %v2697_v52 }
 0x1af   :  { %v575_v8 = vpop.trf.xlu1  ;;  %2621 = vmatprep.subr.mxu0 %v2913_v12 }
 0x1b0   :  { %2615 = vmatmul.mubr.msk.f32.vlgmr.msra.gmra.mrb[14].mxu1 %vm583_vm2, %v575_v8 }
 0x1b1   :  { %2634 = vmatprep.mubr.msk.f32.mxu1 %vm2914_vm1, %v2913_v12 }
 0x1b2   :  { %2622 = vmatpush3.msk.msra.mxu0 %vm1994_vm3, %v1983_v36  ;;  %v2387_v36 = vld [vmem:[%s3486_s3 + $0x5] ss:$0 sm:$0xff] }
 0x1b3   :  { %2624 = vmatmul.mubr.msk.f32.vlgmr.msra.gmra.mrb[16].mxu0 %vm1990_vm4, %v1985_v27  ;;  %2705 = vmatprep.subr.bf16.mxu0 %v2912_v4 }
 0x1b4   :  { %2645 = vmatprep.mubr.msk.f32.mxu0 %vm2914_vm1, %v2913_v12 }
 0x247   :  { %v732_v53 = vpop.f32.mrb[0].mxu1 }
 0x248   :  { %v2490_v54 = vpop.f32.mrb[1].mxu1 }
 0x24b   :  { %v656_v55 = vpop.f32.mrb[0].mxu0 }
 0x24c   :  { %v733_v10 = vadd.f32 %v732_v53, %v656_v55  ;;  %v2481_v39 = vpop.f32.mrb[1].mxu0 }
 0x251   :  { %v812_v13 = vpop.f32.mrb[2].mxu0 }
 0x252   :  { %v816_v23 = vadd.f32 %v812_v13, %v733_v10  ;;  %v2499_v48 = vpop.f32.mrb[3].mxu0 }
 0x253   :  { %v893_v41 = vpop.f32.mrb[2].mxu1 }
 0x254   :  { %v897_v18 = vadd.f32 %v893_v41, %v816_v23  ;;  %v2508_v49 = vpop.f32.mrb[3].mxu1 }
 0x257   :  { %v974_v56 = vpop.f32.mrb[4].mxu0 }
 0x258   :  { %v978_v32 = vadd.f32 %v974_v56, %v897_v18  ;;  %v2517_v57 = vpop.f32.mrb[5].mxu0 }
 0x25b   :  { %v1055_v58 = vpop.f32.mrb[4].mxu1 }
 0x25c   :  { %v1059_v1 = vadd.f32 %v1055_v58, %v978_v32  ;;  %v2526_v42 = vpop.f32.mrb[5].mxu1 }
 0x25f   :  { %v1136_v35 = vpop.f32.mrb[6].mxu0 }
 0x260   :  { %v1140_v2 = vadd.f32 %v1136_v35, %v1059_v1  ;;  %v2535_v12 = vpop.f32.mrb[7].mxu0 }
 0x263   :  { %v1217_v59 = vpop.f32.mrb[6].mxu1 }
 0x264   :  { %v1221_v3 = vadd.f32 %v1217_v59, %v1140_v2  ;;  %v2544_v43 = vpop.f32.mrb[7].mxu1 }
 0x267   :  { %v1298_v60 = vpop.f32.mrb[8].mxu0 }
 0x268   :  { %v1302_v24 = vadd.f32 %v1298_v60, %v1221_v3  ;;  %v2553_v61 = vpop.f32.mrb[9].mxu0 }
 0x26b   :  { %v1379_v16 = vpop.f32.mrb[8].mxu1 }
 0x26c   :  { %v1383_v62 = vadd.f32 %v1379_v16, %v1302_v24  ;;  %v2562_v26 = vpop.f32.mrb[9].mxu1 }
 0x26f   :  { %v1460_v0 = vpop.f32.mrb[10].mxu0 }
 0x270   :  { %v1464_v6 = vadd.f32 %v1460_v0, %v1383_v62  ;;  %v2571_v5 = vpop.f32.mrb[11].mxu0 }
 0x273   :  { %v1541_v47 = vpop.f32.mrb[10].mxu1 }
 0x274   :  { %v1545_v11 = vadd.f32 %v1541_v47, %v1464_v6  ;;  %v2580_v17 = vpop.f32.mrb[11].mxu1 }
 0x277   :  { %v1622_v15 = vpop.f32.mrb[12].mxu0 }
 0x278   :  { %v1626_v7 = vadd.f32 %v1622_v15, %v1545_v11  ;;  %v2589_v63 = vpop.f32.mrb[13].mxu0 }
 0x27b   :  { %v1703_v29 = vpop.f32.mrb[12].mxu1 }
 0x27c   :  { %v1707_v40 = vadd.f32 %v1703_v29, %v1626_v7  ;;  %v2598_v9 = vpop.f32.mrb[13].mxu1 }
 0x27f   :  { %v1784_v14 = vpop.f32.mrb[14].mxu0 }
 0x280   :  { %v1788_v19 = vadd.f32 %v1784_v14, %v1707_v40  ;;  %v2607_v22 = vpop.f32.mrb[15].mxu0 }
 0x283   :  { %v1865_v37 = vpop.f32.mrb[14].mxu1 }
 0x284   :  { %v1869_v20 = vadd.f32 %v1865_v37, %v1788_v19  ;;  %v2616_v21 = vpop.f32.mrb[15].mxu1  ;;  %v2099_v37 = vld [vmem:[%s3487_s4 + $0x18] sm:$0xff] }
 0x286   :  { %v1875_v51 = vadd.f32 %v2385_v30, %v1869_v20  ;;  %v2064_v19 = vpop.f32.mrb[16].mxu0  ;;  %v2100_v30 = vld [vmem:[%s3487_s4 + $0x20] sm:$0xff]  ;;  %v2101_v20 = vld [vmem:[%s3487_s4 + $0x28] sm:$0xff] }
 0x287   :  { %v2625_v22 = vpop.f32.mrb[17].mxu0  ;;  %v2700_v21 = vpack.c.bf16 %v2100_v30, %v2099_v37 }
 0x288   :  { %2836 = vtanh.f32 %v1875_v51  ;;  %v2102_v51 = vld [vmem:[%s3487_s4 + $0x30] sm:$0xff] }
 0x289   :  { %2838 = vpow2.f32 %v2071_v38  ;;  %2701 = vmatpush3.bf16.msra.mxu1 %v2700_v21 }
 0x28a   :  { %2702 = vmatprep.subr.bf16.mxu1 %v2912_v4 }
 0x292   :  { %v3400_v31 = vpop.eup %2836 }
 0x293   :  { %v1883_v44 = vmul.f32 %v3400_v31, %v2386_v25  ;;  %v2839_v33 = vpop.eup %2838  ;;  %v2703_v25 = vpack.c.bf16 %v2102_v51, %v2101_v20 }
 0x294   :  { %v2073_v8 = vadd.f32 1.0, %v2839_v33 }
 0x295   :  { %v1885_v45 = vsel %vm1884_vm5, %v1883_v44, 0.0  ;;  %2704 = vmatpush3.bf16.msra.mxu1 %v2703_v25  ;;  %v2916_v44 = vmov 839922192  }
 0x296   :  { %1886 = vadd.xlane.f32.xlu0 %v1885_v45  ;;  %2840 = vrcp.f32 %v2073_v8  ;;  %v1944_v45 = vunpack.c.l.s4 %v2916_v44 }
 0x298   :  { %v1945_v46 = vunpack.c.0.s8 %v1944_v45 }
 0x29a   :  { %v1948_v38 = vsub.s32 %v1945_v46, %v3497_v50 }
 0x2a0   :  { %v2841_v28 = vpop.eup %2840 }
 0x2a1   :  { %v2076_v34 = vmul.f32 0.2, %v2841_v28 }
 0x2a3   :  { %v2084_v52 = vsub.f32 1.0, %v2076_v34 }
 0x2a5   :  { %2086 = vrot.lane.b32.xlu1 %v2084_v52, %s2915_s17 }
 0x2ac   :  { %2078 = vrot.lane.b32.xlu0 %v2076_v34, %s2915_s17 }
 0x317   :  { %v2087_v14 = vpop.permute.xlu1 %2086 }
 0x323   :  { %v1887_v27 = vpop.xlane.xlu0 %1886 }
 0x324   :  { %v1892_v53 = vadd.f32 %v2387_v36, %v1887_v27  ;;  %v1894_v36 = vcombine.high %v3400_v31, %v3400_v31 }
 0x326   :  { %v1897_v54 = vcombine.high %v1892_v53, %v1892_v53  ;;  %v1900_v55 = vsel %vm1899_vm6, %v1892_v53, -inf }
 0x327   :  { %v1901_v10 = vrot.slane %v1900_v55, 4  ;;  %v2079_v40 = vpop.permute.xlu0 %2078 }
 0x328   :  { %v1907_v39 = vsel %vm1899_vm6, %v1897_v54, -inf  ;;  %2711 = vpush %v2079_v40 }
 0x329   :  { %v1902_v13 = vmax.f32 %v1900_v55, %v1901_v10  ;;  %v1908_v23 = vrot.slane %v1907_v39, 4  ;;  %2713 = vpush %v2087_v14 }
 0x32b   :  { %v1903_v48 = vrot.slane %v1902_v13, 2  ;;  %v1909_v41 = vmax.f32 %v1907_v39, %v1908_v23 }
 0x32d   :  { %v1904_v18 = vmax.f32 %v1902_v13, %v1903_v48  ;;  %v1910_v49 = vrot.slane %v1909_v41, 2 }
 0x32f   :  { %v1905_v56 = vrot.slane %v1904_v18, 1  ;;  %v1911_v32 = vmax.f32 %v1909_v41, %v1910_v49  ;;  %v2388_v41 = vld [vmem:[%s3486_s3 + $0x2] ss:$0 sm:$0xff] }
 0x331   :  { %v1906_v57 = vmax.f32 %v1904_v18, %v1905_v56  ;;  %v1912_v58 = vrot.slane %v1911_v32, 1  ;;  %v2065_v56 = vadd.f32 %v2388_v41, %v2064_v19 }
 0x333   :  { %v1913_v1 = vmax.f32 %v1911_v32, %v1912_v58  ;;  %v1914_v42 = vsub.f32 %v1892_v53, %v1906_v57 }
 0x335   :  { %v1915_v35 = vsub.f32 %v1897_v54, %v1913_v1  ;;  %v1916_v2 = vmul.f32 1.442695, %v1914_v42 }
 0x337   :  { %2842 = vpow2.f32 %v1916_v2  ;;  %v1918_v12 = vmul.f32 1.442695, %v1915_v35 }
 0x339   :  { %2844 = vpow2.f32 %v1918_v12 }
 0x341   :  { %v2843_v59 = vpop.eup %2842 }
 0x342   :  { %v1920_v3 = vsel %vm1899_vm6, %v2843_v59, 0.0 }
 0x343   :  { %v2845_v43 = vpop.eup %2844  ;;  %v1921_v60 = vrot.slane %v1920_v3, 4 }
 0x344   :  { %v1927_v24 = vsel %vm1899_vm6, %v2845_v43, 0.0 }
 0x345   :  { %v1922_v61 = vadd.f32 %v1921_v60, %v1920_v3  ;;  %v1928_v16 = vrot.slane %v1927_v24, 4 }
 0x347   :  { %v1923_v62 = vrot.slane %v1922_v61, 2  ;;  %v1929_v26 = vadd.f32 %v1928_v16, %v1927_v24  ;;  %v2183_v16 = vld [vmem:[%s3487_s4 + $0x48] sm:$0xff] }
 0x349   :  { %v1924_v0 = vadd.f32 %v1923_v62, %v1922_v61  ;;  %v1930_v6 = vrot.slane %v1929_v26, 2  ;;  %v2182_v61 = vld [vmem:[%s3487_s4 + $0x40] sm:$0xff]  ;;  %v2184_v62 = vld [vmem:[%s3487_s4 + $0x50] sm:$0xff] }
 0x34b   :  { %v1931_v5 = vadd.f32 %v1930_v6, %v1929_v26  ;;  %v1925_v47 = vrot.slane %v1924_v0, 1  ;;  %v2706_v26 = vpack.c.bf16 %v2183_v16, %v2182_v61 }
 0x34d   :  { %v1926_v11 = vadd.f32 %v1925_v47, %v1924_v0  ;;  %v1932_v17 = vrot.slane %v1931_v5, 1  ;;  %v2185_v0 = vld [vmem:[%s3487_s4 + $0x58] sm:$0xff]  ;;  %2707 = vmatpush3.bf16.msra.mxu0 %v2706_v26  ;;  %s2917_s4 = smov [#allocation4]  }
 0x34e   :  { %v2709_v6 = vpack.c.bf16 %v2185_v0, %v2184_v62  ;;  %2708 = vmatprep.subr.bf16.mxu0 %v2912_v4  ;;  %s2296_s17 = sshll.u32 %s2917_s4, 4  ;;  %s2297_s17 = int_to_ptr.vmem [resolvable:$true] %s2296_s17 }
 0x34f   :  { %2846 = vrcp.f32 %v1926_v11  ;;  %v1933_v15 = vadd.f32 %v1932_v17, %v1931_v5  ;;  %v2391_v5 = vld [vmem:[%s3486_s3 + $0x3] ss:$0 sm:$0xff]  ;;  %p2867_p1 = scmp.lt.s32.totalorder %s2297_s17, %s2297_s17 }
 0x351   :  { %2848 = vrcp.f32 %v1933_v15  ;;  %2710 = vmatpush3.bf16.msra.mxu0 %v2709_v6 }
 0x352   :  { %2850 = vtanh.f32 %v2065_v56 }
 0x359   :  { %v2847_v7 = vpop.eup %2846  ;;  %s2712_s2 = spop %2711 }
 0x35a   :  { %v1936_v63 = vmul.f32 %v2847_v7, %v2843_v59  ;;  %s2714_s30 = spop %2713  ;;  %v2081_v42 = vstv %s2712_s2  ;;  %v2393_v7 = vld [vmem:[%s3486_s3 + $0x4] ss:$0 sm:$0xff]  ;;  %s2862_s3 = scalar_lea.vmem %s2297_s17, 32 }
 0x35b   :  { %v2849_v29 = vpop.eup %2848  ;;  %v2089_v2 = vstv %s2714_s30  ;;  %p2863_p0 = scmp.ne.s32.totalorder %s2297_s17, %s2862_s3  ;;  %p2868_p2 = scmp.lt.s32.totalorder %s2862_s3, %s2862_s3 }
 0x35c   :  { %1940 = vperm.xlu0 %2724, %v1936_v63   ;;  %v1937_v9 = vmul.f32 %v2849_v29, %v2845_v43  ;;  %v2851_v1 = vpop.eup %2850 }
 0x35d   :  { %v2083_v59 = vmul.f32 %v2851_v1, %v2081_v42  ;;  %p2869_p3 = por %p2868_p2, %p2867_p1 }
 0x35f   :  { %p2870_p4 = pnand %p2869_p3, %p2863_p0 }
 0x360   :  { %1952 = vperm.xlu0 %2724, %v1937_v9  }
 0x3db   :  { %v1941_v33 = vpop.permute.xlu0 %1940 }
 0x3dc   :  { %v1949_v8 = vrot.slane %v1941_v33, %v1948_v38 }
 0x3de   :  { %v1962_v28 = vmul.f32 %v3400_v31, %v1949_v8 }
 0x3df   :  { %v1953_v34 = vpop.permute.xlu0 %1952 }
 0x3e0   :  { %v1965_v52 = vsel %vm1964_vm7, %v1962_v28, 0.0  ;;  %v1961_v27 = vrot.slane %v1953_v34, %v1948_v38 }
 0x3e1   :  { %v1966_v53 = vrot.slane %v1965_v52, 4 }
 0x3e2   :  { %v1963_v54 = vmul.f32 %v1961_v27, %v1894_v36 }
 0x3e3   :  { %v1967_v55 = vadd.f32 %v1966_v53, %v1965_v52 }
 0x3e4   :  { %v1972_v10 = vsel %vm1964_vm7, %v1963_v54, 0.0 }
 0x3e5   :  { %v1968_v39 = vrot.slane %v1967_v55, 2  ;;  %v1973_v13 = vrot.slane %v1972_v10, 4 }
 0x3e7   :  { %v1969_v23 = vadd.f32 %v1968_v39, %v1967_v55  ;;  %v1974_v48 = vadd.f32 %v1973_v13, %v1972_v10 }
 0x3e9   :  { %v1970_v18 = vrot.slane %v1969_v23, 1  ;;  %v1975_v49 = vrot.slane %v1974_v48, 2 }
 0x3eb   :  { %v1971_v32 = vadd.f32 %v1970_v18, %v1969_v23  ;;  %v1976_v57 = vadd.f32 %v1975_v49, %v1974_v48 }
 0x3ed   :  { %v1977_v58 = vrot.slane %v1976_v57, 1  ;;  %2852 = vtanh.f32 %v1971_v32 }
 0x3ef   :  { %v1978_v31 = vadd.f32 %v1977_v58, %v1976_v57 }
 0x3f1   :  { %2854 = vtanh.f32 %v1978_v31 }
 0x3f7   :  { %v2853_v35 = vpop.eup %2852 }
 0x3f8   :  { %v2091_v3 = vmul.f32 %v2853_v35, %v2089_v2 }
 0x3fb   :  { %v2855_v12 = vpop.eup %2854 }
 0x3fc   :  { %v2092_v43 = vmul.f32 %v2855_v12, %v2089_v2 }
 0x3fe   :  { %v2096_v60 = vsel %vm2095_vm8, %v2092_v43, %v2091_v3 }
 0x3ff   :  { %v2098_v24 = vadd.f32 %v2096_v60, %v2083_v59 }
 0x401   :  { %2635 = vmatmul.mubr.msk.f32.vlgmr.msra.gmra.mrb[16].mxu1 %vm1884_vm5, %v2098_v24 }
 0x4d4   :  { %v2177_v47 = vpop.f32.mrb[16].mxu1 }
 0x4d5   :  { %v2178_v11 = vadd.f32 %v2391_v5, %v2177_v47  ;;  %v2636_v17 = vpop.f32.mrb[17].mxu1 }
 0x4d7   :  { %2856 = vtanh.f32 %v2178_v11 }
 0x4e1   :  { %v2857_v15 = vpop.eup %2856 }
 0x4e2   :  { %2646 = vmatmul.mubr.msk.f32.vlgmr.msra.gmra.mrb[18].mxu0 %vm1884_vm5, %v2857_v15 }
 0x5b5   :  { %v2260_v63 = vpop.f32.mrb[18].mxu0 }
 0x5b6   :  { %v2261_v29 = vadd.f32 %v2393_v7, %v2260_v63  ;;  %v2647_v4 = vpop.f32.mrb[19].mxu0 }
 0x5b8   :  { %v2266_v40 = vsel %vm2264_vm9, %v2261_v29, -inf  ;;  %2265 = vst.msk [vmem:[#allocation4] sm:$0x3] %vm2264_vm9, %v2261_v29 }
 0x5b9   :  { %2267 = vmax.xlane.f32.xlu0 %v2266_v40 }
 0x646   :  { %v2268_v9 = vpop.xlane.xlu0 %2267 }
 0x647   :  { %v2269_v14 = vsub.f32 %v2261_v29, %v2268_v9 }
 0x649   :  { %v2270_v19 = vmul.f32 1.442695, %v2269_v14 }
 0x64b   :  { %2858 = vpow2.f32 %v2270_v19 }
 0x655   :  { %v2859_v22 = vpop.eup %2858 }
 0x656   :  { %v2272_v37 = vsel %vm2264_vm9, %v2859_v22, 0.0 }
 0x657   :  { %2273 = vadd.xlane.f32.xlu0 %v2272_v37 }
 0x658   :  { %2873 = shalt.err (!%p2870_p4)
}
 0x659   :  { %s2874_s20 = scalar_lea.hbm %s3490_s7, 32 }
 0x65a   :  { %p2875_p5 = scmp.ne.s32.totalorder %s3490_s7, %s2874_s20  ;;  %p2878_p6 = scmp.lt.u32.totalorder %s2874_s20, %s3490_s7 }
 0x65c   :  { %p2880_p7 = pnand %p2878_p6, %p2875_p5 }
 0x65e   :  { %2883 = shalt.err (!%p2880_p7)
}
 0x65f   :  { %2299 = dma.vmem_to_hbm [thread:$0]  %s2297_s17, 32, %s3490_s7, [#allocation5]  }
 0x660   :  { %s2918_s27 = smov [#allocation2]  }
 0x661   :  { %s2286_s28 = sshll.u32 %s2918_s27, 4  ;;  %s2287_s28 = int_to_ptr.vmem [resolvable:$true] %s2286_s28 }
 0x662   :  { %s2884_s29 = scalar_lea.vmem %s2287_s28, 32  ;;  %p2889_p9 = scmp.lt.s32.totalorder %s2287_s28, %s2287_s28 }
 0x663   :  { %p2885_p8 = scmp.ne.s32.totalorder %s2287_s28, %s2884_s29  ;;  %p2890_p10 = scmp.lt.s32.totalorder %s2884_s29, %s2884_s29 }
 0x665   :  { %p2891_p11 = por %p2890_p10, %p2889_p9 }
 0x667   :  { %p2892_p12 = pnand %p2891_p11, %p2885_p8 }
 0x6e4   :  { %v2274_v30 = vpop.xlane.xlu0 %2273 }
 0x6e5   :  { %2860 = vlog2.f32 %v2274_v30 }
 0x6ef   :  { %v2861_v20 = vpop.eup %2860 }
 0x6f0   :  { %v2276_v21 = vmul.f32 0.6931472, %v2861_v20 }
 0x6f2   :  { %v2277_v51 = vadd.f32 %v2276_v21, %v2268_v9 }
 0x6f4   :  { %v2278_v25 = vsub.f32 %v2261_v29, %v2277_v51 }
 0x6f6   :  { %2279 = vst.msk [vmem:[#allocation2] sm:$0x3] %vm2264_vm9, %v2278_v25 }
 0x6f7   :  { %2895 = shalt.err (!%p2892_p12)
}
 0x6f8   :  { %s2896_s30 = scalar_lea.hbm %s3489_s6, 32 }
 0x6f9   :  { %p2897_p13 = scmp.ne.s32.totalorder %s3489_s6, %s2896_s30  ;;  %p2900_p0 = scmp.lt.u32.totalorder %s2896_s30, %s3489_s6 }
 0x6fb   :  { %p2902_p1 = pnand %p2900_p0, %p2897_p13 }
 0x6fd   :  { %2905 = shalt.err (!%p2902_p1)
}
 0x6fe   :  { %2289 = dma.vmem_to_hbm [thread:$0]  %s2287_s28, 32, %s3489_s6, [#allocation3]  }
 0x6ff   :  { %2906 = dma.done.wait [#allocation3], 32  }
 0x700   :  { %2907 = vsyncadd [#allocation3], 4294967264 }
 0x701   :  { %2908 = dma.done.wait [#allocation5], 32  }
 0x702   :  { %2909 = vsyncadd [#allocation5], 4294967264 }
 0x703   :  { %2306 = vsyncpa [#allocation3], 1 }
 0x704   :  { %2307 = vsyncpa [#allocation5], 1 }

</bundles_post_ra>
